<compile_context>
chip_gen: v6e
topology: v6e:2x2x1
jax: 0.10.0
libtpu: 0.0.40
codegen_flags: <defaults>
</compile_context>

<pallas_src>
import functools

import jax
import jax.numpy as jnp
from jax import lax
from jax.experimental import pallas as pl
from jax.experimental.pallas import tpu as pltpu


# ---------------------------------------------------------------------------
# Fused Pallas kernel (one grid step = one batch sample)
# ---------------------------------------------------------------------------
def _leaky_relu(y):
    return jnp.where(y >= 0.0, y, 0.2 * y)


def _critic_kernel(x_ref, w1_ref, b1_ref, w2_ref, b2_ref, w3_ref, b3_ref,
                   wl_ref, bl_ref, wt_ref, bt_ref,
                   vec_ref, out_ref, buf2, buf3, *, apply_sigmoid):
    f32 = jnp.float32
    n1 = w1_ref.shape[2]          # 16*md lanes  (= Wo1*C1, 128 at md=8)
    n2 = w2_ref.shape[2]          # 16*md lanes
    n3 = w3_ref.shape[2]          # 16*md lanes

    # Zero the pair-row scratch buffers: the rows / lane-halves that are never
    # overwritten below are exactly the conv zero-padding rows.
    buf2[...] = jnp.zeros_like(buf2)
    buf3[...] = jnp.zeros_like(buf3)

    # ---- block 1: Conv(1 -> md) + LeakyReLU ------------------------------
    # Output rows are produced in 4 classes (row index mod 4) so every scratch
    # write below is a contiguous, 128-lane-aligned 2-D store (no scatter).
    for m in range(4):
        acc = jnp.zeros((4, n1), f32)
        for si in range(2):
            s, o = (m + si) % 4, (m + si) // 4
            acc += jnp.dot(x_ref[s, o:o + 4, :], w1_ref[si],
                           preferred_element_type=f32)
        y = _leaky_relu(acc + b1_ref[...])
        if m == 0:
            buf2[0, 0:4, n1:2 * n1] = y
        elif m == 1:
            buf2[1, 0:4, 0:n1] = y
        elif m == 2:
            buf2[1, 0:4, n1:2 * n1] = y
        else:
            buf2[0, 1:5, 0:n1] = y

    # ---- block 2: Conv(md -> 2md) + folded BatchNorm + LeakyReLU ---------
    for m in range(2):
        acc = jnp.zeros((4, n2), f32)
        for si in range(2):
            s, o = (m + si) % 2, (m + si) // 2
            acc += jnp.dot(buf2[s, o:o + 4, :], w2_ref[si],
                           preferred_element_type=f32)
        y = _leaky_relu(acc + b2_ref[...])
        if m == 0:
            buf3[0:4, n2:2 * n2] = y
        else:
            buf3[1:5, 0:n2] = y

    # ---- block 3: Conv(2md -> 4md) + folded BatchNorm + LeakyReLU --------
    acc = jnp.zeros((4, n3), f32)
    for si in range(2):
        acc += jnp.dot(buf3[si:si + 4, :], w3_ref[si],
                       preferred_element_type=f32)
    act3 = _leaky_relu(acc + b3_ref[...])     # (4, 16*md): rows = h, lanes = (w, c)

    # ---- Linear (4*4*4md -> O) + Dropout(eval) + Linear (O -> 1) ---------
    vec = bl_ref[...]                          # (1, O)
    for h in range(4):
        vec = vec + jnp.dot(act3[h:h + 1, :], wl_ref[h],
                            preferred_element_type=f32)
    logit = jnp.dot(vec, wt_ref[...], preferred_element_type=f32) + bt_ref[...]
    if apply_sigmoid:
        logit = jax.nn.sigmoid(logit)

    vec_ref[...] = vec
    out_ref[...] = logit


# ---------------------------------------------------------------------------
# One-time weight / input repacking (wrapper side)
# ---------------------------------------------------------------------------
def _fold_bn(w, b, gamma, beta, mean, var, eps=1e-5):
    scale = gamma / jnp.sqrt(var + eps)
    return w * scale[:, None, None, None], b * scale + (beta - mean * scale)


def _band_weights(w, w_in):
    """Banded matmul weights for a 4x4 / stride-2 / pad-1 conv on pair-rows.

    Pair-row q, half ty holds (unpadded) input row 2q + ty - 1; lane layout of
    a row is (ty, w_src, ci).  Output lane layout is (j, co).  Returns one
    (2*w_in*cin, (w_in//2)*cout) band per row shift si in {0,1}
    (kernel row kh = 2*si + ty); column padding is implicit (invalid taps = 0).
    """
    cout, cin = w.shape[0], w.shape[1]
    wo = w_in // 2
    K, N = 2 * w_in * cin, wo * cout
    lane = jnp.arange(K)
    ty = lane // (w_in * cin)
    wsrc = (lane // cin) % w_in
    ci = lane % cin
    col = jnp.arange(N)
    j = col // cout
    co = col % cout
    kw = wsrc[:, None] - 2 * j[None, :] + 1          # (K, N)
    valid = (kw >= 0) & (kw <= 3)
    kw_c = jnp.clip(kw, 0, 3)
    bands = []
    for si in range(2):
        kh = 2 * si + ty
        vals = w[co[None, :], ci[:, None], kh[:, None], kw_c]
        bands.append(jnp.where(valid, vals, 0.0))
    return jnp.stack(bands, axis=0).astype(jnp.float32)


def _lane_bias(b, wo):
    return jnp.tile(b, wo).reshape(1, -1).astype(jnp.float32)


def prepare_kernel_params(params, model_dim):
    """BN folding + banded conv weights + permuted linear weights (done once)."""
    md = model_dim
    kp = {}
    kp["w1b"] = _band_weights(params["w1"], 32)
    kp["b1"] = _lane_bias(params["b1"], 16)

    w2, b2 = _fold_bn(params["w2"], params["b2"], params["bn2_gamma"],
                      params["bn2_beta"], params["bn2_mean"], params["bn2_var"])
    kp["w2b"] = _band_weights(w2, 16)
    kp["b2"] = _lane_bias(b2, 8)

    w3, b3 = _fold_bn(params["w3"], params["b3"], params["bn3_gamma"],
                      params["bn3_beta"], params["bn3_mean"], params["bn3_var"])
    kp["w3b"] = _band_weights(w3, 8)
    kp["b3"] = _lane_bias(b3, 4)

    c3 = 4 * md
    out_dim = params["lin_w"].shape[0]
    # torch flatten order is (c, h, w); kernel feature order is rows=h, lane=(w, c)
    wl = params["lin_w"].reshape(out_dim, c3, 4, 4)        # (O, c, h, w)
    wl = jnp.transpose(wl, (2, 3, 1, 0)).reshape(4, 4 * c3, out_dim)
    kp["wl"] = wl.astype(jnp.float32)                      # (4, 16*md, O)
    kp["bl"] = params["lin_b"].reshape(1, -1).astype(jnp.float32)
    kp["wt"] = params["tail_w"].T.astype(jnp.float32)      # (O, 1)
    kp["bt"] = params["tail_b"].reshape(1, 1).astype(jnp.float32)
    return kp


def _pack_input(img):
    """(B,1,32,32) NCHW -> pair-row layout (B, 4, 5, 64):
    buffer[b, s, r, ty*32 + w] = (row-padded image)[4r + s pair, ty]."""
    B = img.shape[0]
    x = img[:, 0]                                  # (B, 32, 32)
    x = jnp.pad(x, ((0, 0), (1, 1), (0, 0)))       # rows padded -> (B, 34, 32)
    x = x.reshape(B, 17, 64)                       # pair rows, lane = (ty, w)
    x = jnp.pad(x, ((0, 0), (0, 3), (0, 0)))       # pair rows 17 -> 20
    x = x.reshape(B, 5, 4, 64)                     # (r, s)
    return jnp.transpose(x, (0, 2, 1, 3))          # (B, s, r, lane)


def _bcast_spec(arr):
    zeros = (0,) * arr.ndim
    return pl.BlockSpec(arr.shape, lambda b, _z=zeros: _z)


# ---------------------------------------------------------------------------
# Critic forward (single fused pallas_call)
# ---------------------------------------------------------------------------
def critic_forward(kparams, img, mode):
    """img: (B, 1, 32, 32) float32 (NCHW, like the PyTorch module)."""
    B, _, H, W = img.shape
    assert (H, W) == (32, 32), "Critic expects 32x32 inputs (4*4*4*md flatten)"
    n1 = kparams["w1b"].shape[2]
    n2 = kparams["w2b"].shape[2]
    out_dim = kparams["bl"].shape[1]

    x1 = _pack_input(img.astype(jnp.float32))

    kernel = functools.partial(_critic_kernel,
                               apply_sigmoid=(mode == "dcgan"))
    operands = (x1, kparams["w1b"], kparams["b1"], kparams["w2b"], kparams["b2"],
                kparams["w3b"], kparams["b3"], kparams["wl"], kparams["bl"],
                kparams["wt"], kparams["bt"])

    in_specs = [pl.BlockSpec((None,) + x1.shape[1:],
                             lambda b: (b, 0, 0, 0))]
    in_specs += [_bcast_spec(a) for a in operands[1:]]

    vec, logit = pl.pallas_call(
        kernel,
        out_shape=(jax.ShapeDtypeStruct((B, 1, out_dim), jnp.float32),
                   jax.ShapeDtypeStruct((B, 1, 1), jnp.float32)),
        grid=(B,),
        in_specs=in_specs,
        out_specs=(
            pl.BlockSpec((None, 1, out_dim), lambda b: (b, 0, 0)),
            pl.BlockSpec((None, 1, 1), lambda b: (b, 0, 0)),
        ),
        scratch_shapes=[
            pltpu.VMEM((2, 5, 2 * n1), jnp.float32),   # block-2 input pair rows
            pltpu.VMEM((5, 2 * n2), jnp.float32),      # block-3 input pair rows
        ],
        compiler_params=pltpu.CompilerParams(
            dimension_semantics=("parallel",)),        # batch across TCs (v7x)
    )(*operands)

    return logit.reshape(-1), vec.reshape(B, out_dim)


# ---------------------------------------------------------------------------
# Parameters (deterministic, synthetic) and pure-JAX reference
# ---------------------------------------------------------------------------
def init_params(key, model_dim, output_dim):
    ks = jax.random.split(key, 16)
    md = model_dim
    p = {}

    def conv_w(k, cout, cin):
        return 0.02 * jax.random.normal(k, (cout, cin, 4, 4), jnp.float32)

    p["w1"] = conv_w(ks[0], md, 1)
    p["b1"] = 0.01 * jax.random.normal(ks[1], (md,), jnp.float32)
    p["w2"] = conv_w(ks[2], 2 * md, md)
    p["b2"] = 0.01 * jax.random.normal(ks[3], (2 * md,), jnp.float32)
    p["bn2_gamma"] = 1.0 + 0.1 * jax.random.normal(ks[4], (2 * md,), jnp.float32)
    p["bn2_beta"] = 0.1 * jax.random.normal(ks[5], (2 * md,), jnp.float32)
    p["bn2_mean"] = 0.05 * jax.random.normal(ks[6], (2 * md,), jnp.float32)
    p["bn2_var"] = 1.0 + 0.1 * jnp.abs(jax.random.normal(ks[7], (2 * md,), jnp.float32))
    p["w3"] = conv_w(ks[8], 4 * md, 2 * md)
    p["b3"] = 0.01 * jax.random.normal(ks[9], (4 * md,), jnp.float32)
    p["bn3_gamma"] = 1.0 + 0.1 * jax.random.normal(ks[10], (4 * md,), jnp.float32)
    p["bn3_beta"] = 0.1 * jax.random.normal(ks[11], (4 * md,), jnp.float32)
    p["bn3_mean"] = 0.05 * jax.random.normal(ks[12], (4 * md,), jnp.float32)
    p["bn3_var"] = 1.0 + 0.1 * jnp.abs(jax.random.normal(ks[13], (4 * md,), jnp.float32))
    feat = 4 * 4 * 4 * md
    p["lin_w"] = 0.02 * jax.random.normal(ks[14], (output_dim, feat), jnp.float32)
    p["lin_b"] = jnp.zeros((output_dim,), jnp.float32)
    p["tail_w"] = 0.02 * jax.random.normal(ks[15], (1, output_dim), jnp.float32)
    p["tail_b"] = jnp.zeros((1,), jnp.float32)
    return p


def reference_forward(params, img, mode):
    """Plain-XLA reference (eval-mode BN, Dropout identity) for validation."""
    prec = lax.Precision.HIGHEST

    def conv(x, w, b):
        y = lax.conv_general_dilated(
            x, w, window_strides=(2, 2), padding=((1, 1), (1, 1)),
            dimension_numbers=("NCHW", "OIHW", "NCHW"), precision=prec)
        return y + b[None, :, None, None]

    def bn(x, g, beta, mean, var, eps=1e-5):
        s = g / jnp.sqrt(var + eps)
        return x * s[None, :, None, None] + (beta - mean * s)[None, :, None, None]

    def lrelu(x):
        return jnp.where(x >= 0, x, 0.2 * x)

    x = lrelu(conv(img, params["w1"], params["b1"]))
    x = lrelu(bn(conv(x, params["w2"], params["b2"]), params["bn2_gamma"],
                 params["bn2_beta"], params["bn2_mean"], params["bn2_var"]))
    x = lrelu(bn(conv(x, params["w3"], params["b3"]), params["bn3_gamma"],
                 params["bn3_beta"], params["bn3_mean"], params["bn3_var"]))
    flat = x.reshape(x.shape[0], -1)
    vec = jnp.dot(flat, params["lin_w"].T, precision=prec) + params["lin_b"]
    out = jnp.dot(vec, params["tail_w"].T, precision=prec) + params["tail_b"]
    if mode == "dcgan":
        out = jax.nn.sigmoid(out)
    return out.reshape(-1), vec


# ---------------------------------------------------------------------------
if __name__ == "__main__":
    MODE = "dcgan"
    MODEL_DIM = 8          # conv channels 8/16/32 -> every conv output is 128 lanes
    OUTPUT_DIM = 32
    BATCH = 2

    key = jax.random.PRNGKey(0)
    k_img, k_par = jax.random.split(key)

    # 32x32 input so three stride-2 convs give the hard-coded 4x4 spatial.
    img = jax.random.normal(k_img, (BATCH, 1, 32, 32), jnp.float32)
    params = init_params(k_par, MODEL_DIM, OUTPUT_DIM)
    kparams = prepare_kernel_params(params, MODEL_DIM)

    forward = jax.jit(critic_forward, static_argnames=("mode",))
    out, out_vec = forward(kparams, img, mode=MODE)
    jax.block_until_ready(out)
    jax.block_until_ready(out_vec)

    assert out.shape == (BATCH,)
    assert out_vec.shape == (BATCH, OUTPUT_DIM)

    # correctness check against the plain-XLA reference
    ref_out, ref_vec = reference_forward(params, img, MODE)
    assert jnp.allclose(out_vec, ref_vec, atol=2e-2, rtol=2e-2), \
        float(jnp.max(jnp.abs(out_vec - ref_vec)))
    assert jnp.allclose(out, ref_out, atol=2e-2, rtol=2e-2), \
        float(jnp.max(jnp.abs(out - ref_out)))

    print("KERNEL_OK")
</pallas_src>

<mosaic_0001>
module attributes {stable_mosaic.version = 11 : i64} {
  func.func @_critic_kernel(%arg0: i32, %arg1: memref<1x4x5x64xf32, #tpu.memory_space<vmem>>, %arg2: memref<2x64x128xf32, #tpu.memory_space<vmem>>, %arg3: memref<1x128xf32, #tpu.memory_space<vmem>>, %arg4: memref<2x256x128xf32, #tpu.memory_space<vmem>>, %arg5: memref<1x128xf32, #tpu.memory_space<vmem>>, %arg6: memref<2x256x128xf32, #tpu.memory_space<vmem>>, %arg7: memref<1x128xf32, #tpu.memory_space<vmem>>, %arg8: memref<4x128x32xf32, #tpu.memory_space<vmem>>, %arg9: memref<1x32xf32, #tpu.memory_space<vmem>>, %arg10: memref<32x1xf32, #tpu.memory_space<vmem>>, %arg11: memref<1x1xf32, #tpu.memory_space<vmem>>, %arg12: memref<1x1x32xf32, #tpu.memory_space<vmem>>, %arg13: memref<1x1x1xf32, #tpu.memory_space<vmem>>, %arg14: memref<2x5x256xf32, #tpu.memory_space<vmem>>, %arg15: memref<5x256xf32, #tpu.memory_space<vmem>>) attributes {dimension_semantics = [#tpu.dimension_semantics<parallel>], iteration_bounds = array<i64: 2>, scalar_prefetch = 0 : i64, scratch_operands = 2 : i64, tpu.core_type = #tpu.core_type<tc>, window_params = [{transform_indices = @transform_0, window_bounds = array<i64: 1, 4, 5, 64>}, {pipeline_mode = #tpu.pipeline_mode<synchronous>, transform_indices = @transform_1, window_bounds = array<i64: 2, 64, 128>}, {pipeline_mode = #tpu.pipeline_mode<synchronous>, transform_indices = @transform_2, window_bounds = array<i64: 1, 128>}, {pipeline_mode = #tpu.pipeline_mode<synchronous>, transform_indices = @transform_3, window_bounds = array<i64: 2, 256, 128>}, {pipeline_mode = #tpu.pipeline_mode<synchronous>, transform_indices = @transform_4, window_bounds = array<i64: 1, 128>}, {pipeline_mode = #tpu.pipeline_mode<synchronous>, transform_indices = @transform_5, window_bounds = array<i64: 2, 256, 128>}, {pipeline_mode = #tpu.pipeline_mode<synchronous>, transform_indices = @transform_6, window_bounds = array<i64: 1, 128>}, {pipeline_mode = #tpu.pipeline_mode<synchronous>, transform_indices = @transform_7, window_bounds = array<i64: 4, 128, 32>}, {pipeline_mode = #tpu.pipeline_mode<synchronous>, transform_indices = @transform_8, window_bounds = array<i64: 1, 32>}, {pipeline_mode = #tpu.pipeline_mode<synchronous>, transform_indices = @transform_9, window_bounds = array<i64: 32, 1>}, {pipeline_mode = #tpu.pipeline_mode<synchronous>, transform_indices = @transform_10, window_bounds = array<i64: 1, 1>}, {transform_indices = @transform_11, window_bounds = array<i64: 1, 1, 32>}, {transform_indices = @transform_12, window_bounds = array<i64: 1, 1, 1>}]} {
    %cst = arith.constant 0.000000e+00 : f32
    %0 = vector.broadcast %cst : f32 to vector<2x5x256xf32>
    %c0 = arith.constant 0 : index
    %c0_0 = arith.constant 0 : index
    %c0_1 = arith.constant 0 : index
    %1 = vector.load %arg14[%c0, %c0_0, %c0_1] : memref<2x5x256xf32, #tpu.memory_space<vmem>>, vector<2x5x256xf32>
    tpu.vector_store %arg14[%c0, %c0_0, %c0_1], %0 {strides = array<i32>} : memref<2x5x256xf32, #tpu.memory_space<vmem>>, vector<2x5x256xf32>,
    %cst_2 = arith.constant 0.000000e+00 : f32
    %2 = vector.broadcast %cst_2 : f32 to vector<5x256xf32>
    %c0_3 = arith.constant 0 : index
    %c0_4 = arith.constant 0 : index
    %3 = vector.load %arg15[%c0_3, %c0_4] : memref<5x256xf32, #tpu.memory_space<vmem>>, vector<5x256xf32>
    tpu.vector_store %arg15[%c0_3, %c0_4], %2 {strides = array<i32>} : memref<5x256xf32, #tpu.memory_space<vmem>>, vector<5x256xf32>,
    %cst_5 = arith.constant 0.000000e+00 : f32
    %4 = vector.broadcast %cst_5 : f32 to vector<4x128xf32>
    %c0_6 = arith.constant 0 : index
    %c0_7 = arith.constant 0 : index
    %c0_8 = arith.constant 0 : index
    %c0_9 = arith.constant 0 : index
    %5 = vector.load %arg1[%c0_6, %c0_7, %c0_8, %c0_9] : memref<1x4x5x64xf32, #tpu.memory_space<vmem>>, vector<1x1x4x64xf32>
    %6 = vector.shape_cast %5 : vector<1x1x4x64xf32> to vector<4x64xf32>
    %c0_10 = arith.constant 0 : index
    %c0_11 = arith.constant 0 : index
    %c0_12 = arith.constant 0 : index
    %7 = vector.load %arg2[%c0_10, %c0_11, %c0_12] : memref<2x64x128xf32, #tpu.memory_space<vmem>>, vector<1x64x128xf32>
    %8 = vector.shape_cast %7 : vector<1x64x128xf32> to vector<64x128xf32>
    %cst_13 = arith.constant dense<0.000000e+00> : vector<4x128xf32>
    %9 = tpu.matmul %6, %8, %cst_13 {dimension_numbers = #tpu.dot_dimension_numbers<[1], [0], [0], [1], [0, 0, 1, 1], [], []>} : vector<4x64xf32>, vector<64x128xf32>, vector<4x128xf32> -> vector<4x128xf32>
    %10 = arith.addf %4, %9 : vector<4x128xf32>
    %c0_14 = arith.constant 0 : index
    %c1 = arith.constant 1 : index
    %c0_15 = arith.constant 0 : index
    %c0_16 = arith.constant 0 : index
    %11 = vector.load %arg1[%c0_14, %c1, %c0_15, %c0_16] : memref<1x4x5x64xf32, #tpu.memory_space<vmem>>, vector<1x1x4x64xf32>
    %12 = vector.shape_cast %11 : vector<1x1x4x64xf32> to vector<4x64xf32>
    %c1_17 = arith.constant 1 : index
    %c0_18 = arith.constant 0 : index
    %c0_19 = arith.constant 0 : index
    %13 = vector.load %arg2[%c1_17, %c0_18, %c0_19] : memref<2x64x128xf32, #tpu.memory_space<vmem>>, vector<1x64x128xf32>
    %14 = vector.shape_cast %13 : vector<1x64x128xf32> to vector<64x128xf32>
    %cst_20 = arith.constant dense<0.000000e+00> : vector<4x128xf32>
    %15 = tpu.matmul %12, %14, %cst_20 {dimension_numbers = #tpu.dot_dimension_numbers<[1], [0], [0], [1], [0, 0, 1, 1], [], []>} : vector<4x64xf32>, vector<64x128xf32>, vector<4x128xf32> -> vector<4x128xf32>
    %16 = arith.addf %10, %15 : vector<4x128xf32>
    %c0_21 = arith.constant 0 : index
    %c0_22 = arith.constant 0 : index
    %17 = vector.load %arg3[%c0_21, %c0_22] : memref<1x128xf32, #tpu.memory_space<vmem>>, vector<1x128xf32>
    %18 = vector.broadcast %17 : vector<1x128xf32> to vector<4x128xf32>
    %19 = arith.addf %16, %18 : vector<4x128xf32>
    %cst_23 = arith.constant 0.000000e+00 : f32
    %20 = vector.broadcast %cst_23 : f32 to vector<4x128xf32>
    %21 = arith.cmpf oge, %19, %20 : vector<4x128xf32>
    %cst_24 = arith.constant 2.000000e-01 : f32
    %22 = vector.broadcast %cst_24 : f32 to vector<4x128xf32>
    %23 = arith.mulf %22, %19 : vector<4x128xf32>
    %24 = arith.select %21, %19, %23 : vector<4x128xi1>, vector<4x128xf32>
    %c0_25 = arith.constant 0 : index
    %c0_26 = arith.constant 0 : index
    %c128 = arith.constant 128 : index
    %25 = vector.load %arg14[%c0_25, %c0_26, %c128] : memref<2x5x256xf32, #tpu.memory_space<vmem>>, vector<1x4x128xf32>
    %26 = vector.shape_cast %25 : vector<1x4x128xf32> to vector<4x128xf32>
    %27 = vector.shape_cast %24 : vector<4x128xf32> to vector<1x4x128xf32>
    tpu.vector_store %arg14[%c0_25, %c0_26, %c128], %27 {strides = array<i32>} : memref<2x5x256xf32, #tpu.memory_space<vmem>>, vector<1x4x128xf32>,
    %cst_27 = arith.constant 0.000000e+00 : f32
    %28 = vector.broadcast %cst_27 : f32 to vector<4x128xf32>
    %c0_28 = arith.constant 0 : index
    %c1_29 = arith.constant 1 : index
    %c0_30 = arith.constant 0 : index
    %c0_31 = arith.constant 0 : index
    %29 = vector.load %arg1[%c0_28, %c1_29, %c0_30, %c0_31] : memref<1x4x5x64xf32, #tpu.memory_space<vmem>>, vector<1x1x4x64xf32>
    %30 = vector.shape_cast %29 : vector<1x1x4x64xf32> to vector<4x64xf32>
    %c0_32 = arith.constant 0 : index
    %c0_33 = arith.constant 0 : index
    %c0_34 = arith.constant 0 : index
    %31 = vector.load %arg2[%c0_32, %c0_33, %c0_34] : memref<2x64x128xf32, #tpu.memory_space<vmem>>, vector<1x64x128xf32>
    %32 = vector.shape_cast %31 : vector<1x64x128xf32> to vector<64x128xf32>
    %cst_35 = arith.constant dense<0.000000e+00> : vector<4x128xf32>
    %33 = tpu.matmul %30, %32, %cst_35 {dimension_numbers = #tpu.dot_dimension_numbers<[1], [0], [0], [1], [0, 0, 1, 1], [], []>} : vector<4x64xf32>, vector<64x128xf32>, vector<4x128xf32> -> vector<4x128xf32>
    %34 = arith.addf %28, %33 : vector<4x128xf32>
    %c0_36 = arith.constant 0 : index
    %c2 = arith.constant 2 : index
    %c0_37 = arith.constant 0 : index
    %c0_38 = arith.constant 0 : index
    %35 = vector.load %arg1[%c0_36, %c2, %c0_37, %c0_38] : memref<1x4x5x64xf32, #tpu.memory_space<vmem>>, vector<1x1x4x64xf32>
    %36 = vector.shape_cast %35 : vector<1x1x4x64xf32> to vector<4x64xf32>
    %c1_39 = arith.constant 1 : index
    %c0_40 = arith.constant 0 : index
    %c0_41 = arith.constant 0 : index
    %37 = vector.load %arg2[%c1_39, %c0_40, %c0_41] : memref<2x64x128xf32, #tpu.memory_space<vmem>>, vector<1x64x128xf32>
    %38 = vector.shape_cast %37 : vector<1x64x128xf32> to vector<64x128xf32>
    %cst_42 = arith.constant dense<0.000000e+00> : vector<4x128xf32>
    %39 = tpu.matmul %36, %38, %cst_42 {dimension_numbers = #tpu.dot_dimension_numbers<[1], [0], [0], [1], [0, 0, 1, 1], [], []>} : vector<4x64xf32>, vector<64x128xf32>, vector<4x128xf32> -> vector<4x128xf32>
    %40 = arith.addf %34, %39 : vector<4x128xf32>
    %c0_43 = arith.constant 0 : index
    %c0_44 = arith.constant 0 : index
    %41 = vector.load %arg3[%c0_43, %c0_44] : memref<1x128xf32, #tpu.memory_space<vmem>>, vector<1x128xf32>
    %42 = vector.broadcast %41 : vector<1x128xf32> to vector<4x128xf32>
    %43 = arith.addf %40, %42 : vector<4x128xf32>
    %cst_45 = arith.constant 0.000000e+00 : f32
    %44 = vector.broadcast %cst_45 : f32 to vector<4x128xf32>
    %45 = arith.cmpf oge, %43, %44 : vector<4x128xf32>
    %cst_46 = arith.constant 2.000000e-01 : f32
    %46 = vector.broadcast %cst_46 : f32 to vector<4x128xf32>
    %47 = arith.mulf %46, %43 : vector<4x128xf32>
    %48 = arith.select %45, %43, %47 : vector<4x128xi1>, vector<4x128xf32>
    %c1_47 = arith.constant 1 : index
    %c0_48 = arith.constant 0 : index
    %c0_49 = arith.constant 0 : index
    %49 = vector.load %arg14[%c1_47, %c0_48, %c0_49] : memref<2x5x256xf32, #tpu.memory_space<vmem>>, vector<1x4x128xf32>
    %50 = vector.shape_cast %49 : vector<1x4x128xf32> to vector<4x128xf32>
    %51 = vector.shape_cast %48 : vector<4x128xf32> to vector<1x4x128xf32>
    tpu.vector_store %arg14[%c1_47, %c0_48, %c0_49], %51 {strides = array<i32>} : memref<2x5x256xf32, #tpu.memory_space<vmem>>, vector<1x4x128xf32>,
    %cst_50 = arith.constant 0.000000e+00 : f32
    %52 = vector.broadcast %cst_50 : f32 to vector<4x128xf32>
    %c0_51 = arith.constant 0 : index
    %c2_52 = arith.constant 2 : index
    %c0_53 = arith.constant 0 : index
    %c0_54 = arith.constant 0 : index
    %53 = vector.load %arg1[%c0_51, %c2_52, %c0_53, %c0_54] : memref<1x4x5x64xf32, #tpu.memory_space<vmem>>, vector<1x1x4x64xf32>
    %54 = vector.shape_cast %53 : vector<1x1x4x64xf32> to vector<4x64xf32>
    %c0_55 = arith.constant 0 : index
    %c0_56 = arith.constant 0 : index
    %c0_57 = arith.constant 0 : index
    %55 = vector.load %arg2[%c0_55, %c0_56, %c0_57] : memref<2x64x128xf32, #tpu.memory_space<vmem>>, vector<1x64x128xf32>
    %56 = vector.shape_cast %55 : vector<1x64x128xf32> to vector<64x128xf32>
    %cst_58 = arith.constant dense<0.000000e+00> : vector<4x128xf32>
    %57 = tpu.matmul %54, %56, %cst_58 {dimension_numbers = #tpu.dot_dimension_numbers<[1], [0], [0], [1], [0, 0, 1, 1], [], []>} : vector<4x64xf32>, vector<64x128xf32>, vector<4x128xf32> -> vector<4x128xf32>
    %58 = arith.addf %52, %57 : vector<4x128xf32>
    %c0_59 = arith.constant 0 : index
    %c3 = arith.constant 3 : index
    %c0_60 = arith.constant 0 : index
    %c0_61 = arith.constant 0 : index
    %59 = vector.load %arg1[%c0_59, %c3, %c0_60, %c0_61] : memref<1x4x5x64xf32, #tpu.memory_space<vmem>>, vector<1x1x4x64xf32>
    %60 = vector.shape_cast %59 : vector<1x1x4x64xf32> to vector<4x64xf32>
    %c1_62 = arith.constant 1 : index
    %c0_63 = arith.constant 0 : index
    %c0_64 = arith.constant 0 : index
    %61 = vector.load %arg2[%c1_62, %c0_63, %c0_64] : memref<2x64x128xf32, #tpu.memory_space<vmem>>, vector<1x64x128xf32>
    %62 = vector.shape_cast %61 : vector<1x64x128xf32> to vector<64x128xf32>
    %cst_65 = arith.constant dense<0.000000e+00> : vector<4x128xf32>
    %63 = tpu.matmul %60, %62, %cst_65 {dimension_numbers = #tpu.dot_dimension_numbers<[1], [0], [0], [1], [0, 0, 1, 1], [], []>} : vector<4x64xf32>, vector<64x128xf32>, vector<4x128xf32> -> vector<4x128xf32>
    %64 = arith.addf %58, %63 : vector<4x128xf32>
    %c0_66 = arith.constant 0 : index
    %c0_67 = arith.constant 0 : index
    %65 = vector.load %arg3[%c0_66, %c0_67] : memref<1x128xf32, #tpu.memory_space<vmem>>, vector<1x128xf32>
    %66 = vector.broadcast %65 : vector<1x128xf32> to vector<4x128xf32>
    %67 = arith.addf %64, %66 : vector<4x128xf32>
    %cst_68 = arith.constant 0.000000e+00 : f32
    %68 = vector.broadcast %cst_68 : f32 to vector<4x128xf32>
    %69 = arith.cmpf oge, %67, %68 : vector<4x128xf32>
    %cst_69 = arith.constant 2.000000e-01 : f32
    %70 = vector.broadcast %cst_69 : f32 to vector<4x128xf32>
    %71 = arith.mulf %70, %67 : vector<4x128xf32>
    %72 = arith.select %69, %67, %71 : vector<4x128xi1>, vector<4x128xf32>
    %c1_70 = arith.constant 1 : index
    %c0_71 = arith.constant 0 : index
    %c128_72 = arith.constant 128 : index
    %73 = vector.load %arg14[%c1_70, %c0_71, %c128_72] : memref<2x5x256xf32, #tpu.memory_space<vmem>>, vector<1x4x128xf32>
    %74 = vector.shape_cast %73 : vector<1x4x128xf32> to vector<4x128xf32>
    %75 = vector.shape_cast %72 : vector<4x128xf32> to vector<1x4x128xf32>
    tpu.vector_store %arg14[%c1_70, %c0_71, %c128_72], %75 {strides = array<i32>} : memref<2x5x256xf32, #tpu.memory_space<vmem>>, vector<1x4x128xf32>,
    %cst_73 = arith.constant 0.000000e+00 : f32
    %76 = vector.broadcast %cst_73 : f32 to vector<4x128xf32>
    %c0_74 = arith.constant 0 : index
    %c3_75 = arith.constant 3 : index
    %c0_76 = arith.constant 0 : index
    %c0_77 = arith.constant 0 : index
    %77 = vector.load %arg1[%c0_74, %c3_75, %c0_76, %c0_77] : memref<1x4x5x64xf32, #tpu.memory_space<vmem>>, vector<1x1x4x64xf32>
    %78 = vector.shape_cast %77 : vector<1x1x4x64xf32> to vector<4x64xf32>
    %c0_78 = arith.constant 0 : index
    %c0_79 = arith.constant 0 : index
    %c0_80 = arith.constant 0 : index
    %79 = vector.load %arg2[%c0_78, %c0_79, %c0_80] : memref<2x64x128xf32, #tpu.memory_space<vmem>>, vector<1x64x128xf32>
    %80 = vector.shape_cast %79 : vector<1x64x128xf32> to vector<64x128xf32>
    %cst_81 = arith.constant dense<0.000000e+00> : vector<4x128xf32>
    %81 = tpu.matmul %78, %80, %cst_81 {dimension_numbers = #tpu.dot_dimension_numbers<[1], [0], [0], [1], [0, 0, 1, 1], [], []>} : vector<4x64xf32>, vector<64x128xf32>, vector<4x128xf32> -> vector<4x128xf32>
    %82 = arith.addf %76, %81 : vector<4x128xf32>
    %c0_82 = arith.constant 0 : index
    %c0_83 = arith.constant 0 : index
    %c1_84 = arith.constant 1 : index
    %c0_85 = arith.constant 0 : index
    %83 = vector.load %arg1[%c0_82, %c0_83, %c1_84, %c0_85] : memref<1x4x5x64xf32, #tpu.memory_space<vmem>>, vector<1x1x4x64xf32>
    %84 = vector.shape_cast %83 : vector<1x1x4x64xf32> to vector<4x64xf32>
    %c1_86 = arith.constant 1 : index
    %c0_87 = arith.constant 0 : index
    %c0_88 = arith.constant 0 : index
    %85 = vector.load %arg2[%c1_86, %c0_87, %c0_88] : memref<2x64x128xf32, #tpu.memory_space<vmem>>, vector<1x64x128xf32>
    %86 = vector.shape_cast %85 : vector<1x64x128xf32> to vector<64x128xf32>
    %cst_89 = arith.constant dense<0.000000e+00> : vector<4x128xf32>
    %87 = tpu.matmul %84, %86, %cst_89 {dimension_numbers = #tpu.dot_dimension_numbers<[1], [0], [0], [1], [0, 0, 1, 1], [], []>} : vector<4x64xf32>, vector<64x128xf32>, vector<4x128xf32> -> vector<4x128xf32>
    %88 = arith.addf %82, %87 : vector<4x128xf32>
    %c0_90 = arith.constant 0 : index
    %c0_91 = arith.constant 0 : index
    %89 = vector.load %arg3[%c0_90, %c0_91] : memref<1x128xf32, #tpu.memory_space<vmem>>, vector<1x128xf32>
    %90 = vector.broadcast %89 : vector<1x128xf32> to vector<4x128xf32>
    %91 = arith.addf %88, %90 : vector<4x128xf32>
    %cst_92 = arith.constant 0.000000e+00 : f32
    %92 = vector.broadcast %cst_92 : f32 to vector<4x128xf32>
    %93 = arith.cmpf oge, %91, %92 : vector<4x128xf32>
    %cst_93 = arith.constant 2.000000e-01 : f32
    %94 = vector.broadcast %cst_93 : f32 to vector<4x128xf32>
    %95 = arith.mulf %94, %91 : vector<4x128xf32>
    %96 = arith.select %93, %91, %95 : vector<4x128xi1>, vector<4x128xf32>
    %c0_94 = arith.constant 0 : index
    %c1_95 = arith.constant 1 : index
    %c0_96 = arith.constant 0 : index
    %97 = vector.load %arg14[%c0_94, %c1_95, %c0_96] : memref<2x5x256xf32, #tpu.memory_space<vmem>>, vector<1x4x128xf32>
    %98 = vector.shape_cast %97 : vector<1x4x128xf32> to vector<4x128xf32>
    %99 = vector.shape_cast %96 : vector<4x128xf32> to vector<1x4x128xf32>
    tpu.vector_store %arg14[%c0_94, %c1_95, %c0_96], %99 {strides = array<i32>} : memref<2x5x256xf32, #tpu.memory_space<vmem>>, vector<1x4x128xf32>,
    %cst_97 = arith.constant 0.000000e+00 : f32
    %100 = vector.broadcast %cst_97 : f32 to vector<4x128xf32>
    %c0_98 = arith.constant 0 : index
    %c0_99 = arith.constant 0 : index
    %c0_100 = arith.constant 0 : index
    %101 = vector.load %arg14[%c0_98, %c0_99, %c0_100] : memref<2x5x256xf32, #tpu.memory_space<vmem>>, vector<1x4x256xf32>
    %102 = vector.shape_cast %101 : vector<1x4x256xf32> to vector<4x256xf32>
    %c0_101 = arith.constant 0 : index
    %c0_102 = arith.constant 0 : index
    %c0_103 = arith.constant 0 : index
    %103 = vector.load %arg4[%c0_101, %c0_102, %c0_103] : memref<2x256x128xf32, #tpu.memory_space<vmem>>, vector<1x256x128xf32>
    %104 = vector.shape_cast %103 : vector<1x256x128xf32> to vector<256x128xf32>
    %cst_104 = arith.constant dense<0.000000e+00> : vector<4x128xf32>
    %105 = tpu.matmul %102, %104, %cst_104 {dimension_numbers = #tpu.dot_dimension_numbers<[1], [0], [0], [1], [0, 0, 1, 1], [], []>} : vector<4x256xf32>, vector<256x128xf32>, vector<4x128xf32> -> vector<4x128xf32>
    %106 = arith.addf %100, %105 : vector<4x128xf32>
    %c1_105 = arith.constant 1 : index
    %c0_106 = arith.constant 0 : index
    %c0_107 = arith.constant 0 : index
    %107 = vector.load %arg14[%c1_105, %c0_106, %c0_107] : memref<2x5x256xf32, #tpu.memory_space<vmem>>, vector<1x4x256xf32>
    %108 = vector.shape_cast %107 : vector<1x4x256xf32> to vector<4x256xf32>
    %c1_108 = arith.constant 1 : index
    %c0_109 = arith.constant 0 : index
    %c0_110 = arith.constant 0 : index
    %109 = vector.load %arg4[%c1_108, %c0_109, %c0_110] : memref<2x256x128xf32, #tpu.memory_space<vmem>>, vector<1x256x128xf32>
    %110 = vector.shape_cast %109 : vector<1x256x128xf32> to vector<256x128xf32>
    %cst_111 = arith.constant dense<0.000000e+00> : vector<4x128xf32>
    %111 = tpu.matmul %108, %110, %cst_111 {dimension_numbers = #tpu.dot_dimension_numbers<[1], [0], [0], [1], [0, 0, 1, 1], [], []>} : vector<4x256xf32>, vector<256x128xf32>, vector<4x128xf32> -> vector<4x128xf32>
    %112 = arith.addf %106, %111 : vector<4x128xf32>
    %c0_112 = arith.constant 0 : index
    %c0_113 = arith.constant 0 : index
    %113 = vector.load %arg5[%c0_112, %c0_113] : memref<1x128xf32, #tpu.memory_space<vmem>>, vector<1x128xf32>
    %114 = vector.broadcast %113 : vector<1x128xf32> to vector<4x128xf32>
    %115 = arith.addf %112, %114 : vector<4x128xf32>
    %cst_114 = arith.constant 0.000000e+00 : f32
    %116 = vector.broadcast %cst_114 : f32 to vector<4x128xf32>
    %117 = arith.cmpf oge, %115, %116 : vector<4x128xf32>
    %cst_115 = arith.constant 2.000000e-01 : f32
    %118 = vector.broadcast %cst_115 : f32 to vector<4x128xf32>
    %119 = arith.mulf %118, %115 : vector<4x128xf32>
    %120 = arith.select %117, %115, %119 : vector<4x128xi1>, vector<4x128xf32>
    %c0_116 = arith.constant 0 : index
    %c128_117 = arith.constant 128 : index
    %121 = vector.load %arg15[%c0_116, %c128_117] : memref<5x256xf32, #tpu.memory_space<vmem>>, vector<4x128xf32>
    tpu.vector_store %arg15[%c0_116, %c128_117], %120 {strides = array<i32>} : memref<5x256xf32, #tpu.memory_space<vmem>>, vector<4x128xf32>,
    %cst_118 = arith.constant 0.000000e+00 : f32
    %122 = vector.broadcast %cst_118 : f32 to vector<4x128xf32>
    %c1_119 = arith.constant 1 : index
    %c0_120 = arith.constant 0 : index
    %c0_121 = arith.constant 0 : index
    %123 = vector.load %arg14[%c1_119, %c0_120, %c0_121] : memref<2x5x256xf32, #tpu.memory_space<vmem>>, vector<1x4x256xf32>
    %124 = vector.shape_cast %123 : vector<1x4x256xf32> to vector<4x256xf32>
    %c0_122 = arith.constant 0 : index
    %c0_123 = arith.constant 0 : index
    %c0_124 = arith.constant 0 : index
    %125 = vector.load %arg4[%c0_122, %c0_123, %c0_124] : memref<2x256x128xf32, #tpu.memory_space<vmem>>, vector<1x256x128xf32>
    %126 = vector.shape_cast %125 : vector<1x256x128xf32> to vector<256x128xf32>
    %cst_125 = arith.constant dense<0.000000e+00> : vector<4x128xf32>
    %127 = tpu.matmul %124, %126, %cst_125 {dimension_numbers = #tpu.dot_dimension_numbers<[1], [0], [0], [1], [0, 0, 1, 1], [], []>} : vector<4x256xf32>, vector<256x128xf32>, vector<4x128xf32> -> vector<4x128xf32>
    %128 = arith.addf %122, %127 : vector<4x128xf32>
    %c0_126 = arith.constant 0 : index
    %c1_127 = arith.constant 1 : index
    %c0_128 = arith.constant 0 : index
    %129 = vector.load %arg14[%c0_126, %c1_127, %c0_128] : memref<2x5x256xf32, #tpu.memory_space<vmem>>, vector<1x4x256xf32>
    %130 = vector.shape_cast %129 : vector<1x4x256xf32> to vector<4x256xf32>
    %c1_129 = arith.constant 1 : index
    %c0_130 = arith.constant 0 : index
    %c0_131 = arith.constant 0 : index
    %131 = vector.load %arg4[%c1_129, %c0_130, %c0_131] : memref<2x256x128xf32, #tpu.memory_space<vmem>>, vector<1x256x128xf32>
    %132 = vector.shape_cast %131 : vector<1x256x128xf32> to vector<256x128xf32>
    %cst_132 = arith.constant dense<0.000000e+00> : vector<4x128xf32>
    %133 = tpu.matmul %130, %132, %cst_132 {dimension_numbers = #tpu.dot_dimension_numbers<[1], [0], [0], [1], [0, 0, 1, 1], [], []>} : vector<4x256xf32>, vector<256x128xf32>, vector<4x128xf32> -> vector<4x128xf32>
    %134 = arith.addf %128, %133 : vector<4x128xf32>
    %c0_133 = arith.constant 0 : index
    %c0_134 = arith.constant 0 : index
    %135 = vector.load %arg5[%c0_133, %c0_134] : memref<1x128xf32, #tpu.memory_space<vmem>>, vector<1x128xf32>
    %136 = vector.broadcast %135 : vector<1x128xf32> to vector<4x128xf32>
    %137 = arith.addf %134, %136 : vector<4x128xf32>
    %cst_135 = arith.constant 0.000000e+00 : f32
    %138 = vector.broadcast %cst_135 : f32 to vector<4x128xf32>
    %139 = arith.cmpf oge, %137, %138 : vector<4x128xf32>
    %cst_136 = arith.constant 2.000000e-01 : f32
    %140 = vector.broadcast %cst_136 : f32 to vector<4x128xf32>
    %141 = arith.mulf %140, %137 : vector<4x128xf32>
    %142 = arith.select %139, %137, %141 : vector<4x128xi1>, vector<4x128xf32>
    %c1_137 = arith.constant 1 : index
    %c0_138 = arith.constant 0 : index
    %143 = vector.load %arg15[%c1_137, %c0_138] : memref<5x256xf32, #tpu.memory_space<vmem>>, vector<4x128xf32>
    tpu.vector_store %arg15[%c1_137, %c0_138], %142 {strides = array<i32>} : memref<5x256xf32, #tpu.memory_space<vmem>>, vector<4x128xf32>,
    %cst_139 = arith.constant 0.000000e+00 : f32
    %144 = vector.broadcast %cst_139 : f32 to vector<4x128xf32>
    %c0_140 = arith.constant 0 : index
    %c0_141 = arith.constant 0 : index
    %145 = vector.load %arg15[%c0_140, %c0_141] : memref<5x256xf32, #tpu.memory_space<vmem>>, vector<4x256xf32>
    %c0_142 = arith.constant 0 : index
    %c0_143 = arith.constant 0 : index
    %c0_144 = arith.constant 0 : index
    %146 = vector.load %arg6[%c0_142, %c0_143, %c0_144] : memref<2x256x128xf32, #tpu.memory_space<vmem>>, vector<1x256x128xf32>
    %147 = vector.shape_cast %146 : vector<1x256x128xf32> to vector<256x128xf32>
    %cst_145 = arith.constant dense<0.000000e+00> : vector<4x128xf32>
    %148 = tpu.matmul %145, %147, %cst_145 {dimension_numbers = #tpu.dot_dimension_numbers<[1], [0], [0], [1], [0, 0, 1, 1], [], []>} : vector<4x256xf32>, vector<256x128xf32>, vector<4x128xf32> -> vector<4x128xf32>
    %149 = arith.addf %144, %148 : vector<4x128xf32>
    %c1_146 = arith.constant 1 : index
    %c0_147 = arith.constant 0 : index
    %150 = vector.load %arg15[%c1_146, %c0_147] : memref<5x256xf32, #tpu.memory_space<vmem>>, vector<4x256xf32>
    %c1_148 = arith.constant 1 : index
    %c0_149 = arith.constant 0 : index
    %c0_150 = arith.constant 0 : index
    %151 = vector.load %arg6[%c1_148, %c0_149, %c0_150] : memref<2x256x128xf32, #tpu.memory_space<vmem>>, vector<1x256x128xf32>
    %152 = vector.shape_cast %151 : vector<1x256x128xf32> to vector<256x128xf32>
    %cst_151 = arith.constant dense<0.000000e+00> : vector<4x128xf32>
    %153 = tpu.matmul %150, %152, %cst_151 {dimension_numbers = #tpu.dot_dimension_numbers<[1], [0], [0], [1], [0, 0, 1, 1], [], []>} : vector<4x256xf32>, vector<256x128xf32>, vector<4x128xf32> -> vector<4x128xf32>
    %154 = arith.addf %149, %153 : vector<4x128xf32>
    %c0_152 = arith.constant 0 : index
    %c0_153 = arith.constant 0 : index
    %155 = vector.load %arg7[%c0_152, %c0_153] : memref<1x128xf32, #tpu.memory_space<vmem>>, vector<1x128xf32>
    %156 = vector.broadcast %155 : vector<1x128xf32> to vector<4x128xf32>
    %157 = arith.addf %154, %156 : vector<4x128xf32>
    %cst_154 = arith.constant 0.000000e+00 : f32
    %158 = vector.broadcast %cst_154 : f32 to vector<4x128xf32>
    %159 = arith.cmpf oge, %157, %158 : vector<4x128xf32>
    %cst_155 = arith.constant 2.000000e-01 : f32
    %160 = vector.broadcast %cst_155 : f32 to vector<4x128xf32>
    %161 = arith.mulf %160, %157 : vector<4x128xf32>
    %162 = arith.select %159, %157, %161 : vector<4x128xi1>, vector<4x128xf32>
    %c0_156 = arith.constant 0 : index
    %c0_157 = arith.constant 0 : index
    %163 = vector.load %arg9[%c0_156, %c0_157] : memref<1x32xf32, #tpu.memory_space<vmem>>, vector<1x32xf32>
    %164 = vector.extract_strided_slice %162 {offsets = [0, 0], sizes = [1, 128], strides = [1, 1]} : vector<4x128xf32> to vector<1x128xf32>
    %c0_158 = arith.constant 0 : index
    %c0_159 = arith.constant 0 : index
    %c0_160 = arith.constant 0 : index
    %165 = vector.load %arg8[%c0_158, %c0_159, %c0_160] : memref<4x128x32xf32, #tpu.memory_space<vmem>>, vector<1x128x32xf32>
    %166 = vector.shape_cast %165 : vector<1x128x32xf32> to vector<128x32xf32>
    %cst_161 = arith.constant dense<0.000000e+00> : vector<1x32xf32>
    %167 = tpu.matmul %164, %166, %cst_161 {dimension_numbers = #tpu.dot_dimension_numbers<[1], [0], [0], [1], [0, 0, 1, 1], [], []>} : vector<1x128xf32>, vector<128x32xf32>, vector<1x32xf32> -> vector<1x32xf32>
    %168 = arith.addf %163, %167 : vector<1x32xf32>
    %169 = vector.extract_strided_slice %162 {offsets = [1, 0], sizes = [1, 128], strides = [1, 1]} : vector<4x128xf32> to vector<1x128xf32>
    %c1_162 = arith.constant 1 : index
    %c0_163 = arith.constant 0 : index
    %c0_164 = arith.constant 0 : index
    %170 = vector.load %arg8[%c1_162, %c0_163, %c0_164] : memref<4x128x32xf32, #tpu.memory_space<vmem>>, vector<1x128x32xf32>
    %171 = vector.shape_cast %170 : vector<1x128x32xf32> to vector<128x32xf32>
    %cst_165 = arith.constant dense<0.000000e+00> : vector<1x32xf32>
    %172 = tpu.matmul %169, %171, %cst_165 {dimension_numbers = #tpu.dot_dimension_numbers<[1], [0], [0], [1], [0, 0, 1, 1], [], []>} : vector<1x128xf32>, vector<128x32xf32>, vector<1x32xf32> -> vector<1x32xf32>
    %173 = arith.addf %168, %172 : vector<1x32xf32>
    %174 = vector.extract_strided_slice %162 {offsets = [2, 0], sizes = [1, 128], strides = [1, 1]} : vector<4x128xf32> to vector<1x128xf32>
    %c2_166 = arith.constant 2 : index
    %c0_167 = arith.constant 0 : index
    %c0_168 = arith.constant 0 : index
    %175 = vector.load %arg8[%c2_166, %c0_167, %c0_168] : memref<4x128x32xf32, #tpu.memory_space<vmem>>, vector<1x128x32xf32>
    %176 = vector.shape_cast %175 : vector<1x128x32xf32> to vector<128x32xf32>
    %cst_169 = arith.constant dense<0.000000e+00> : vector<1x32xf32>
    %177 = tpu.matmul %174, %176, %cst_169 {dimension_numbers = #tpu.dot_dimension_numbers<[1], [0], [0], [1], [0, 0, 1, 1], [], []>} : vector<1x128xf32>, vector<128x32xf32>, vector<1x32xf32> -> vector<1x32xf32>
    %178 = arith.addf %173, %177 : vector<1x32xf32>
    %179 = vector.extract_strided_slice %162 {offsets = [3, 0], sizes = [1, 128], strides = [1, 1]} : vector<4x128xf32> to vector<1x128xf32>
    %c3_170 = arith.constant 3 : index
    %c0_171 = arith.constant 0 : index
    %c0_172 = arith.constant 0 : index
    %180 = vector.load %arg8[%c3_170, %c0_171, %c0_172] : memref<4x128x32xf32, #tpu.memory_space<vmem>>, vector<1x128x32xf32>
    %181 = vector.shape_cast %180 : vector<1x128x32xf32> to vector<128x32xf32>
    %cst_173 = arith.constant dense<0.000000e+00> : vector<1x32xf32>
    %182 = tpu.matmul %179, %181, %cst_173 {dimension_numbers = #tpu.dot_dimension_numbers<[1], [0], [0], [1], [0, 0, 1, 1], [], []>} : vector<1x128xf32>, vector<128x32xf32>, vector<1x32xf32> -> vector<1x32xf32>
    %183 = arith.addf %178, %182 : vector<1x32xf32>
    %c0_174 = arith.constant 0 : index
    %c0_175 = arith.constant 0 : index
    %184 = vector.load %arg10[%c0_174, %c0_175] : memref<32x1xf32, #tpu.memory_space<vmem>>, vector<32x1xf32>
    %cst_176 = arith.constant dense<0.000000e+00> : vector<1x1xf32>
    %185 = tpu.matmul %183, %184, %cst_176 {dimension_numbers = #tpu.dot_dimension_numbers<[1], [0], [0], [1], [0, 0, 1, 1], [], []>} : vector<1x32xf32>, vector<32x1xf32>, vector<1x1xf32> -> vector<1x1xf32>
    %c0_177 = arith.constant 0 : index
    %c0_178 = arith.constant 0 : index
    %186 = vector.load %arg11[%c0_177, %c0_178] : memref<1x1xf32, #tpu.memory_space<vmem>>, vector<1x1xf32>
    %187 = arith.addf %185, %186 : vector<1x1xf32>
    %188 = arith.negf %187 : vector<1x1xf32>
    %189 = math.exp %188 : vector<1x1xf32>
    %cst_179 = arith.constant 1.000000e+00 : f32
    %190 = vector.broadcast %cst_179 : f32 to vector<1x1xf32>
    %191 = arith.addf %190, %189 : vector<1x1xf32>
    %192 = arith.divf %190, %191 : vector<1x1xf32>
    %c0_180 = arith.constant 0 : index
    %c0_181 = arith.constant 0 : index
    %c0_182 = arith.constant 0 : index
    %193 = vector.load %arg12[%c0_180, %c0_181, %c0_182] : memref<1x1x32xf32, #tpu.memory_space<vmem>>, vector<1x1x32xf32>
    %194 = vector.shape_cast %193 : vector<1x1x32xf32> to vector<1x32xf32>
    %195 = vector.shape_cast %183 : vector<1x32xf32> to vector<1x1x32xf32>
    tpu.vector_store %arg12[%c0_180, %c0_181, %c0_182], %195 {strides = array<i32>} : memref<1x1x32xf32, #tpu.memory_space<vmem>>, vector<1x1x32xf32>,
    %c0_183 = arith.constant 0 : index
    %c0_184 = arith.constant 0 : index
    %c0_185 = arith.constant 0 : index
    %196 = vector.load %arg13[%c0_183, %c0_184, %c0_185] : memref<1x1x1xf32, #tpu.memory_space<vmem>>, vector<1x1x1xf32>
    %197 = vector.shape_cast %196 : vector<1x1x1xf32> to vector<1x1xf32>
    %198 = vector.shape_cast %192 : vector<1x1xf32> to vector<1x1x1xf32>
    tpu.vector_store %arg13[%c0_183, %c0_184, %c0_185], %198 {strides = array<i32>} : memref<1x1x1xf32, #tpu.memory_space<vmem>>, vector<1x1x1xf32>,
    return
  }
  func.func @transform_0(%arg0: i32) -> (i32, i32, i32, i32) {
    %c0_i32 = arith.constant 0 : i32
    %c0_i32_0 = arith.constant 0 : i32
    %c0_i32_1 = arith.constant 0 : i32
    %c0_i32_2 = arith.constant 0 : i32
    return %arg0, %c0_i32, %c0_i32_0, %c0_i32_1 : i32, i32, i32, i32
  }
  func.func @transform_1(%arg0: i32) -> (i32, i32, i32) {
    %c0_i32 = arith.constant 0 : i32
    %c0_i32_0 = arith.constant 0 : i32
    %c0_i32_1 = arith.constant 0 : i32
    %c0_i32_2 = arith.constant 0 : i32
    return %c0_i32, %c0_i32_0, %c0_i32_1 : i32, i32, i32
  }
  func.func @transform_2(%arg0: i32) -> (i32, i32) {
    %c0_i32 = arith.constant 0 : i32
    %c0_i32_0 = arith.constant 0 : i32
    %c0_i32_1 = arith.constant 0 : i32
    return %c0_i32, %c0_i32_0 : i32, i32
  }
  func.func @transform_3(%arg0: i32) -> (i32, i32, i32) {
    %c0_i32 = arith.constant 0 : i32
    %c0_i32_0 = arith.constant 0 : i32
    %c0_i32_1 = arith.constant 0 : i32
    %c0_i32_2 = arith.constant 0 : i32
    return %c0_i32, %c0_i32_0, %c0_i32_1 : i32, i32, i32
  }
  func.func @transform_4(%arg0: i32) -> (i32, i32) {
    %c0_i32 = arith.constant 0 : i32
    %c0_i32_0 = arith.constant 0 : i32
    %c0_i32_1 = arith.constant 0 : i32
    return %c0_i32, %c0_i32_0 : i32, i32
  }
  func.func @transform_5(%arg0: i32) -> (i32, i32, i32) {
    %c0_i32 = arith.constant 0 : i32
    %c0_i32_0 = arith.constant 0 : i32
    %c0_i32_1 = arith.constant 0 : i32
    %c0_i32_2 = arith.constant 0 : i32
    return %c0_i32, %c0_i32_0, %c0_i32_1 : i32, i32, i32
  }
  func.func @transform_6(%arg0: i32) -> (i32, i32) {
    %c0_i32 = arith.constant 0 : i32
    %c0_i32_0 = arith.constant 0 : i32
    %c0_i32_1 = arith.constant 0 : i32
    return %c0_i32, %c0_i32_0 : i32, i32
  }
  func.func @transform_7(%arg0: i32) -> (i32, i32, i32) {
    %c0_i32 = arith.constant 0 : i32
    %c0_i32_0 = arith.constant 0 : i32
    %c0_i32_1 = arith.constant 0 : i32
    %c0_i32_2 = arith.constant 0 : i32
    return %c0_i32, %c0_i32_0, %c0_i32_1 : i32, i32, i32
  }
  func.func @transform_8(%arg0: i32) -> (i32, i32) {
    %c0_i32 = arith.constant 0 : i32
    %c0_i32_0 = arith.constant 0 : i32
    %c0_i32_1 = arith.constant 0 : i32
    return %c0_i32, %c0_i32_0 : i32, i32
  }
  func.func @transform_9(%arg0: i32) -> (i32, i32) {
    %c0_i32 = arith.constant 0 : i32
    %c0_i32_0 = arith.constant 0 : i32
    %c0_i32_1 = arith.constant 0 : i32
    return %c0_i32, %c0_i32_0 : i32, i32
  }
  func.func @transform_10(%arg0: i32) -> (i32, i32) {
    %c0_i32 = arith.constant 0 : i32
    %c0_i32_0 = arith.constant 0 : i32
    %c0_i32_1 = arith.constant 0 : i32
    return %c0_i32, %c0_i32_0 : i32, i32
  }
  func.func @transform_11(%arg0: i32) -> (i32, i32, i32) {
    %c0_i32 = arith.constant 0 : i32
    %c0_i32_0 = arith.constant 0 : i32
    %c0_i32_1 = arith.constant 0 : i32
    return %arg0, %c0_i32, %c0_i32_0 : i32, i32, i32
  }
  func.func @transform_12(%arg0: i32) -> (i32, i32, i32) {
    %c0_i32 = arith.constant 0 : i32
    %c0_i32_0 = arith.constant 0 : i32
    %c0_i32_1 = arith.constant 0 : i32
    return %arg0, %c0_i32, %c0_i32_0 : i32, i32, i32
  }
}

</mosaic_0001>

<bundles_post_ra>
// kernel: critic_forward.1
= control target key start
LH: loop header
LB: loop body
LE: loop exit
PB: predicated region body
PF: predicated region fallthrough
CT: control target
= control target key end

     0   :  { %s4685_s0 = inlined_call_operand.vmem [shape: f32[2,4,5,64], index: 0, kind: input, shape index: {}]   ;;  %s4686_s1 = inlined_call_operand.vmem [shape: f32[2,64,128], index: 1, kind: input, shape index: {}]   ;;  %s4687_s2 = inlined_call_operand.vmem [shape: f32[1,128], index: 2, kind: input, shape index: {}]   ;;  %s4688_s3 = inlined_call_operand.vmem [shape: f32[2,256,128], index: 3, kind: input, shape index: {}]   ;;  %s4689_s4 = inlined_call_operand.vmem [shape: f32[1,128], index: 4, kind: input, shape index: {}]   ;;  %s4690_s5 = inlined_call_operand.vmem [shape: f32[2,256,128], index: 5, kind: input, shape index: {}]   ;;  %s4691_s6 = inlined_call_operand.vmem [shape: f32[1,128], index: 6, kind: input, shape index: {}]   ;;  %s4692_s7 = inlined_call_operand.vmem [shape: f32[4,128,32], index: 7, kind: input, shape index: {}]   ;;  %s4693_s8 = inlined_call_operand.vmem [shape: f32[1,32], index: 8, kind: input, shape index: {}]   ;;  %s4694_s9 = inlined_call_operand.vmem [shape: f32[32,1], index: 9, kind: input, shape index: {}]   ;;  %s4695_s10 = inlined_call_operand.<no memory space> [shape: f32[1,1], index: 10, kind: input, shape index: {}]   ;;  %s4696_s11 = inlined_call_operand.hbm [shape: f32[2,1,32], index: 11, kind: output, shape index: {0}]   ;;  %s4697_s12 = inlined_call_operand.vmem [shape: f32[2,1,1], index: 12, kind: output, shape index: {1}]  }
   0x1   :  { %4717 = sst [smem:[#allocation25_spill]] %s4685_s0  ;;  %v18_v0 = vstv %s4695_s10 }
   0x2   :  { %4718 = sst [smem:[#allocation26_spill]] %s4686_s1  ;;  %19 = vst [vmem:[#allocation4] sm:$0x1] %v18_v0 }
   0x3   :  { %4719 = sst [smem:[#allocation27_spill]] %s4687_s2 }
   0x4   :  { %20 = vsyncpa [#allocation6], 0 }
   0x5   :  { %22 = vsyncpa [#allocation6 + $0x1], 0  ;;  %s3403_s23 = smov 0   ;;  %s3405_s24 = smov 0  }
   0x6   :  { %s3407_s25 = smov 0   ;;  %s3409_s26 = smov 0  }
   0x7 LB: > { %s3424_s10 = sadd.s32 4294967295, %s3330_s26   ;;  %s2358_s27 = sadd.s32 4294967294, %s3330_s26   ;;  %s3330_s26 = sphi %s3409_s26, %s4763_s26   ;;  %s3326_s25 = sphi %s3407_s25, %s4762_s25   ;;  %s3322_s24 = sphi %s3405_s24, %s4761_s24   ;;  %s3318_s23 = sphi %s3403_s23, %s4760_s23  }
   0x8   : > { %s3428_s28 = sadd.s32 1, %s3330_s26   ;;  %s271_s29 = sadd.s32 1, %s3326_s25 }
   0x9   : > { %s268_s30 = ssub.s32 %s3330_s26, %s3428_s28  ;;  %p281_p0 = scmp.ne.s32.totalorder %s3326_s25, %s3322_s24 }
   0xa   : > { %p269_p1 = scmp.eq.s32.totalorder %s268_s30, 0  ;;  %p282_p2 = scmp.eq.s32.totalorder %s3424_s10, 1 }
   0xb   : > { %p287_p3 = scmp.ne.s32.totalorder %s3322_s24, %s3318_s23  ;;  %p288_p4 = scmp.eq.s32.totalorder %s2358_s27, 1 }
   0xc   : > { %s3439_s13 = scalar_select %p269_p1, %s3326_s25, %s271_s29  }
   0xd   : > { %p3441_p5 = por %p282_p2, %p281_p0  ;;  %p3445_p6 = por %p288_p4, %p287_p3 }
   0xe   : > { %p2361_p7 = scmp.ge.s32.totalorder %s3330_s26, 1  ;;  %p370_p8 = scmp.lt.s32.totalorder %s3330_s26, 3 }
  0x10   : > { %p371_p9 = pnand %p2361_p7, %p370_p8 }
  0x12   : > { %374 = sbr.rel (%p371_p9) target bundleno = 1220 (0x4c4), region = 64 }
  0x17   : > { %s4722_s1 = sld [smem:[#allocation26_spill]]  ;;  %v4698_v3 = vmov 0.0   ;;  %p414_p10 = scmp.lt.s32.totalorder %s3424_s10, 1  ;;  %vm448_vm0 = vcmask 523264   ;;  %vm3333_vm1 = vmmov 0   ;;  %v3710_v26 = vld [vmem:[%s4688_s3 + $0x1f8] sm:$0xff] }
  0x18   : > { %2922 = vmatprep.subr.mxu0 %v4698_v3  ;;  %422 = vst [vmem:[#allocation2 + $0x10] sm:$0x1f] %v4698_v3  ;;  %423 = vst [vmem:[#allocation2] sm:$0x1f] %v4698_v3  ;;  %2941 = vmatprep.subr.mxu1 %v4698_v3  ;;  %s4723_s0 = sld [smem:[#allocation25_spill]]  ;;  %v3716_v27 = vld [vmem:[%s4688_s3 + $0x178] sm:$0xff] }
  0x19   : > { %424 = vst [vmem:[#allocation2 + $0x18] sm:$0x1f] %v4698_v3  ;;  %425 = vst [vmem:[#allocation2 + $0x8] sm:$0x1f] %v4698_v3  ;;  %s3509_s22 = scalar_select %p414_p10, %s3424_s10, 1  ;;  %2938 = vmatprep.mubr.msk.f32.mxu0 %vm3333_vm1, %v4698_v3  ;;  %2957 = vmatprep.mubr.msk.f32.mxu1 %vm3333_vm1, %v4698_v3  ;;  %v3722_v28 = vld [vmem:[%s4688_s3 + $0x1f0] sm:$0xff] }
  0x1a   : > { %426 = vst [vmem:[#allocation3] sm:$0x1f] %v4698_v3  ;;  %427 = vst [vmem:[#allocation3 + $0x8] sm:$0x1f] %v4698_v3  ;;  %v3728_v29 = vld [vmem:[%s4688_s3 + $0x170] sm:$0xff]  ;;  %v3734_v30 = vld [vmem:[%s4688_s3 + $0x1e8] sm:$0xff] }
  0x1b   : > { %s2566_s21 = sshll.u32 %s3509_s22, 5  ;;  %v3740_v31 = vld [vmem:[%s4688_s3 + $0x168] sm:$0xff]  ;;  %v3745_v32 = vld [vmem:[%s4688_s3 + $0x1e0] sm:$0xff]  ;;  %v3756_v34 = vld [vmem:[%s4688_s3 + $0x1d8] sm:$0xff]  ;;  %s4741_s2 = sld [smem:[#allocation27_spill]]  ;;  %vm2181_vm9 = vcmask 261120  }
  0x1c   : > { %v3750_v33 = vld [vmem:[%s4688_s3 + $0x160] sm:$0xff]  ;;  %v3762_v35 = vld [vmem:[%s4688_s3 + $0x158] sm:$0xff]  ;;  %v3768_v36 = vld [vmem:[%s4688_s3 + $0x1d0] sm:$0xff]  ;;  %vm2261_vm10 = vcmask 253952   ;;  %s2563_s27 = sshll.u32 %s3424_s10, 4  ;;  %s3334_s18 = smov [#allocation5]  }
  0x1d   : > { %v3454_v1 = vld [vmem:[%s4722_s1 + $0x78] sm:$0xff]  ;;  %v3472_v4 = vld [vmem:[%s4722_s1 + $0x70] sm:$0xff]  ;;  %v3487_v6 = vld [vmem:[%s4722_s1 + $0x68] sm:$0xff]  ;;  %s2279_s16 = scalar_lea.hbm %s4696_s11, %s2563_s27 }
  0x1e   : > { %v3459_v2 = vld [vmem:[%s4722_s1 + $0x38] sm:$0xff]  ;;  %v3477_v5 = vld [vmem:[%s4722_s1 + $0x30] sm:$0xff]  ;;  %2923 = vmatpush3.msra.mxu0 %v3454_v1  ;;  %v3492_v7 = vld [vmem:[%s4722_s1 + $0x28] sm:$0xff]  ;;  %s3559_s19 = scalar_lea.vmem %s4723_s0, %s2566_s21 }
  0x1f   : > { %2942 = vmatpush3.msra.mxu1 %v3459_v2  ;;  %2924 = vmatprep.subr.mxu0 %v4698_v3  ;;  %v3501_v8 = vld [vmem:[%s4722_s1 + $0x60] sm:$0xff]  ;;  %v3518_v10 = vld [vmem:[%s4722_s1 + $0x58] sm:$0xff]  ;;  %v3532_v12 = vld [vmem:[%s4722_s1 + $0x50] sm:$0xff] }
  0x20   : > { %2943 = vmatprep.subr.mxu1 %v4698_v3  ;;  %2925 = vmatpush3.msra.mxu0 %v3472_v4  ;;  %v3506_v9 = vld [vmem:[%s4722_s1 + $0x20] sm:$0xff]  ;;  %v3523_v11 = vld [vmem:[%s4722_s1 + $0x18] sm:$0xff]  ;;  %v3537_v13 = vld [vmem:[%s4722_s1 + $0x10] sm:$0xff] }
  0x21   : > { %2944 = vmatpush3.msra.mxu1 %v3477_v5  ;;  %2926 = vmatprep.subr.mxu0 %v4698_v3  ;;  %v3547_v14 = vld [vmem:[%s4722_s1 + $0x48] sm:$0xff]  ;;  %v3566_v16 = vld [vmem:[%s4722_s1 + $0x40] sm:$0xff]  ;;  %v2377_v20 = vld [vmem:[%s3559_s19 + $0x10] sm:$0xf] }
  0x22   : > { %2945 = vmatprep.subr.mxu1 %v4698_v3  ;;  %2927 = vmatpush3.msra.mxu0 %v3487_v6  ;;  %v3552_v15 = vld [vmem:[%s4722_s1 + $0x8] sm:$0xff]  ;;  %v3573_v17 = vld [vmem:[%s4722_s1] sm:$0xff]  ;;  %v2390_v22 = vld [vmem:[%s3559_s19 + $0x18] sm:$0xf]  ;;  %s3274_s1 = sshll.u32 %s3334_s18, 4  ;;  %s3275_s1 = int_to_ptr.vmem [resolvable:$false] %s3274_s1 }
  0x23   : > { %2946 = vmatpush3.msra.mxu1 %v3492_v7  ;;  %2928 = vmatprep.subr.mxu0 %v4698_v3  ;;  %v2364_v18 = vld [vmem:[%s3559_s19 + $0x8] sm:$0xf]  ;;  %v428_v19 = vld [vmem:[%s3559_s19] sm:$0xf]  ;;  %v2389_v23 = vld [vmem:[%s3559_s19 + $0x10] sm:$0xf] }
  0x24   : > { %2947 = vmatprep.subr.mxu1 %v4698_v3  ;;  %2929 = vmatpush3.msra.mxu0 %v3501_v8  ;;  %v2376_v21 = vld [vmem:[%s3559_s19 + $0x8] sm:$0xf]  ;;  %v971_v24 = vld [vmem:[%s3559_s19 + $0x1] sm:$0xf]  ;;  %v2402_v25 = vld [vmem:[%s3559_s19 + $0x18] sm:$0xf] }
  0x25   : > { %2948 = vmatpush3.msra.mxu1 %v3506_v9  ;;  %2930 = vmatprep.subr.mxu0 %v4698_v3  ;;  %v3774_v37 = vld [vmem:[%s4688_s3 + $0x150] sm:$0xff]  ;;  %v3780_v38 = vld [vmem:[%s4688_s3 + $0x1c8] sm:$0xff]  ;;  %v3792_v40 = vld [vmem:[%s4688_s3 + $0x1c0] sm:$0xff]  ;;  %s407_s19 = sand.u32 1, %s3322_s24  }
  0x26   : > { %2949 = vmatprep.subr.mxu1 %v4698_v3  ;;  %2931 = vmatpush3.msra.mxu0 %v3518_v10  ;;  %v3786_v39 = vld [vmem:[%s4688_s3 + $0x148] sm:$0xff]  ;;  %v3798_v41 = vld [vmem:[%s4688_s3 + $0x140] sm:$0xff]  ;;  %v3806_v42 = vld [vmem:[%s4688_s3 + $0x1b8] sm:$0xff]  ;;  %s408_s20 = scalar_lea.vmem [#allocation5], %s407_s19  ;;  %s2266_s17 = scalar_lea.sflag [#allocation6], %s407_s19 }
  0x27   : > { %2950 = vmatpush3.msra.mxu1 %v3523_v11  ;;  %2932 = vmatprep.subr.mxu0 %v4698_v3  ;;  %v3812_v43 = vld [vmem:[%s4688_s3 + $0x138] sm:$0xff]  ;;  %v3824_v45 = vld [vmem:[%s4688_s3 + $0x1b0] sm:$0xff]  ;;  %v3848_v49 = vld [vmem:[%s4688_s3 + $0x1a8] sm:$0xff]  ;;  %s2281_s29 = sshll.u32 %s408_s20, 4  ;;  %s2282_s29 = int_to_ptr.vmem [resolvable:$true] %s2281_s29 }
  0x28   : > { %2951 = vmatprep.subr.mxu1 %v4698_v3  ;;  %2933 = vmatpush3.msra.mxu0 %v3532_v12  ;;  %v3817_v44 = vld [vmem:[%s4688_s3 + $0xf8] sm:$0xff]  ;;  %v3836_v47 = vld [vmem:[%s4688_s3 + $0x130] sm:$0xff]  ;;  %v3860_v51 = vld [vmem:[%s4688_s3 + $0x128] sm:$0xff]  ;;  %s3270_s0 = scalar_lea.vmem %s2282_s29, 16  ;;  %p3277_p0 = scmp.lt.s32.totalorder %s2282_s29, %s3275_s1 }
  0x29   : > { %2952 = vmatpush3.msra.mxu1 %v3537_v13  ;;  %2934 = vmatprep.subr.mxu0 %v4698_v3  ;;  %v3829_v46 = vld [vmem:[%s4688_s3 + $0x78] sm:$0xff]  ;;  %v3841_v48 = vld [vmem:[%s4688_s3 + $0xf0] sm:$0xff]  ;;  %v3865_v52 = vld [vmem:[%s4688_s3 + $0xe8] sm:$0xff]  ;;  %p3271_p11 = scmp.ne.s32.totalorder %s2282_s29, %s3270_s0 }
  0x2a   : > { %2953 = vmatprep.subr.mxu1 %v4698_v3  ;;  %2935 = vmatpush3.msra.mxu0 %v3547_v14  ;;  %v3853_v50 = vld [vmem:[%s4688_s3 + $0x70] sm:$0xff]  ;;  %v3872_v53 = vld [vmem:[%s4688_s3 + $0x1a0] sm:$0xff]  ;;  %v3877_v54 = vld [vmem:[%s4688_s3 + $0x68] sm:$0xff] }
  0x2b   : > { %2954 = vmatpush3.msra.mxu1 %v3552_v15  ;;  %2936 = vmatprep.subr.mxu0 %v4698_v3  ;;  %v3884_v55 = vld [vmem:[%s4688_s3 + $0x120] sm:$0xff]  ;;  %v3894_v57 = vld [vmem:[%s4688_s3 + $0x198] sm:$0xff]  ;;  %v3918_v61 = vld [vmem:[%s4688_s3 + $0x190] sm:$0xff]  ;;  %p3272_p12 = pnand %p3271_p11, %p3441_p5 }
  0x2c   : > { %2955 = vmatprep.subr.mxu1 %v4698_v3  ;;  %2937 = vmatpush3.msra.mxu0 %v3566_v16  ;;  %v3889_v56 = vld [vmem:[%s4688_s3 + $0xe0] sm:$0xff]  ;;  %v3906_v59 = vld [vmem:[%s4688_s3 + $0x118] sm:$0xff]  ;;  %v3928_v63 = vld [vmem:[%s4688_s3 + $0x110] sm:$0xff] }
  0x2d   : > { %2956 = vmatpush3.msra.mxu1 %v3573_v17  ;;  %2939 = vmatmul.mubr.msk.f32.vlgmr.msra.gmra.mxu0 %vm448_vm0, %v2364_v18  ;;  %v3901_v58 = vld [vmem:[%s4688_s3 + $0x60] sm:$0xff]  ;;  %v3911_v60 = vld [vmem:[%s4688_s3 + $0xd8] sm:$0xff]  ;;  %v3935_v0 = vld [vmem:[%s4688_s3 + $0xd0] sm:$0xff]  ;;  %p3273_p13 = pneg %p3272_p12 }
  0x2e   : > { %2958 = vmatmul.mubr.msk.f32.vlgmr.msra.gmra.mxu1 %vm448_vm0, %v428_v19  ;;  %2960 = vmatprep.subr.mxu0 %v4698_v3  ;;  %v3923_v62 = vld [vmem:[%s4688_s3 + $0x58] sm:$0xff]  ;;  %v4041_v18 = vld [vmem:[%s4688_s3 + $0x20] sm:$0xff] }
  0x2f   : > { %2979 = vmatprep.subr.mxu1 %v4698_v3  ;;  %2961 = vmatpush3.msra.mxu0 %v3454_v1  ;;  %4732 = vst [vmem:[#allocation16_spill] sm:$0xff] %v4041_v18  ;;  %v4047_v19 = vld [vmem:[%s4688_s3 + $0x98] sm:$0xff] }
  0x30   : > { %2980 = vmatpush3.msra.mxu1 %v3459_v2  ;;  %2962 = vmatprep.subr.mxu0 %v4698_v3  ;;  %4733 = vst [vmem:[#allocation17_spill] sm:$0xff] %v4047_v19 }
  0x31   : > { %2981 = vmatprep.subr.mxu1 %v4698_v3  ;;  %2963 = vmatpush3.msra.mxu0 %v3472_v4 }
  0x32   : > { %2982 = vmatpush3.msra.mxu1 %v3477_v5  ;;  %2964 = vmatprep.subr.mxu0 %v4698_v3 }
  0x33   : > { %2983 = vmatprep.subr.mxu1 %v4698_v3  ;;  %2965 = vmatpush3.msra.mxu0 %v3487_v6 }
  0x34   : > { %2984 = vmatpush3.msra.mxu1 %v3492_v7  ;;  %2966 = vmatprep.subr.mxu0 %v4698_v3 }
  0x35   : > { %2985 = vmatprep.subr.mxu1 %v4698_v3  ;;  %2967 = vmatpush3.msra.mxu0 %v3501_v8 }
  0x36   : > { %2986 = vmatpush3.msra.mxu1 %v3506_v9  ;;  %2968 = vmatprep.subr.mxu0 %v4698_v3 }
  0x37   : > { %2987 = vmatprep.subr.mxu1 %v4698_v3  ;;  %2969 = vmatpush3.msra.mxu0 %v3518_v10 }
  0x38   : > { %2988 = vmatpush3.msra.mxu1 %v3523_v11  ;;  %2970 = vmatprep.subr.mxu0 %v4698_v3 }
  0x39   : > { %2989 = vmatprep.subr.mxu1 %v4698_v3  ;;  %2971 = vmatpush3.msra.mxu0 %v3532_v12 }
  0x3a   : > { %2990 = vmatpush3.msra.mxu1 %v3537_v13  ;;  %2972 = vmatprep.subr.mxu0 %v4698_v3 }
  0x3b   : > { %2991 = vmatprep.subr.mxu1 %v4698_v3  ;;  %2973 = vmatpush3.msra.mxu0 %v3547_v14 }
  0x3c   : > { %2992 = vmatpush3.msra.mxu1 %v3552_v15  ;;  %2974 = vmatprep.subr.mxu0 %v4698_v3 }
  0x3d   : > { %2993 = vmatprep.subr.mxu1 %v4698_v3  ;;  %2975 = vmatpush3.msra.mxu0 %v3566_v16 }
  0x3e   : > { %2976 = vmatprep.mubr.msk.f32.mxu0 %vm3333_vm1, %v4698_v3  ;;  %2994 = vmatpush3.msra.mxu1 %v3573_v17 }
  0x3f   : > { %2995 = vmatprep.mubr.msk.f32.mxu1 %vm3333_vm1, %v4698_v3  ;;  %2977 = vmatmul.mubr.msk.f32.vlgmr.msra.gmra.mxu0 %vm448_vm0, %v2377_v20  ;;  %v4053_v20 = vld [vmem:[%s4688_s3 + $0x18] sm:$0xff] }
  0x40   : > { %2996 = vmatmul.mubr.msk.f32.vlgmr.msra.gmra.mxu1 %vm448_vm0, %v2376_v21  ;;  %2998 = vmatprep.subr.mxu0 %v4698_v3  ;;  %4734 = vst [vmem:[#allocation18_spill] sm:$0xff] %v4053_v20  ;;  %v4059_v21 = vld [vmem:[%s4688_s3 + $0x90] sm:$0xff] }
  0x41   : > { %3017 = vmatprep.subr.mxu1 %v4698_v3  ;;  %2999 = vmatpush3.msra.mxu0 %v3454_v1  ;;  %4735 = vst [vmem:[#allocation19_spill] sm:$0xff] %v4059_v21 }
  0x42   : > { %3018 = vmatpush3.msra.mxu1 %v3459_v2  ;;  %3000 = vmatprep.subr.mxu0 %v4698_v3 }
  0x43   : > { %3019 = vmatprep.subr.mxu1 %v4698_v3  ;;  %3001 = vmatpush3.msra.mxu0 %v3472_v4 }
  0x44   : > { %3020 = vmatpush3.msra.mxu1 %v3477_v5  ;;  %3002 = vmatprep.subr.mxu0 %v4698_v3 }
  0x45   : > { %3021 = vmatprep.subr.mxu1 %v4698_v3  ;;  %3003 = vmatpush3.msra.mxu0 %v3487_v6 }
  0x46   : > { %3022 = vmatpush3.msra.mxu1 %v3492_v7  ;;  %3004 = vmatprep.subr.mxu0 %v4698_v3 }
  0x47   : > { %3023 = vmatprep.subr.mxu1 %v4698_v3  ;;  %3005 = vmatpush3.msra.mxu0 %v3501_v8 }
  0x48   : > { %3024 = vmatpush3.msra.mxu1 %v3506_v9  ;;  %3006 = vmatprep.subr.mxu0 %v4698_v3 }
  0x49   : > { %3025 = vmatprep.subr.mxu1 %v4698_v3  ;;  %3007 = vmatpush3.msra.mxu0 %v3518_v10 }
  0x4a   : > { %3026 = vmatpush3.msra.mxu1 %v3523_v11  ;;  %3008 = vmatprep.subr.mxu0 %v4698_v3 }
  0x4b   : > { %3027 = vmatprep.subr.mxu1 %v4698_v3  ;;  %3009 = vmatpush3.msra.mxu0 %v3532_v12 }
  0x4c   : > { %3028 = vmatpush3.msra.mxu1 %v3537_v13  ;;  %3010 = vmatprep.subr.mxu0 %v4698_v3 }
  0x4d   : > { %3029 = vmatprep.subr.mxu1 %v4698_v3  ;;  %3011 = vmatpush3.msra.mxu0 %v3547_v14 }
  0x4e   : > { %3030 = vmatpush3.msra.mxu1 %v3552_v15  ;;  %3012 = vmatprep.subr.mxu0 %v4698_v3 }
  0x4f   : > { %3031 = vmatprep.subr.mxu1 %v4698_v3  ;;  %3013 = vmatpush3.msra.mxu0 %v3566_v16 }
  0x50   : > { %3014 = vmatprep.mubr.msk.f32.mxu0 %vm3333_vm1, %v4698_v3  ;;  %3032 = vmatpush3.msra.mxu1 %v3573_v17 }
  0x51   : > { %3033 = vmatprep.mubr.msk.f32.mxu1 %vm3333_vm1, %v4698_v3  ;;  %3015 = vmatmul.mubr.msk.f32.vlgmr.msra.gmra.mxu0 %vm448_vm0, %v2390_v22  ;;  %v4064_v22 = vld [vmem:[%s4688_s3 + $0x10] sm:$0xff] }
  0x52   : > { %3034 = vmatmul.mubr.msk.f32.vlgmr.msra.gmra.mxu1 %vm448_vm0, %v2389_v23  ;;  %3036 = vmatprep.subr.mxu0 %v4698_v3  ;;  %4736 = vst [vmem:[#allocation20_spill] sm:$0xff] %v4064_v22  ;;  %v4070_v23 = vld [vmem:[%s4688_s3 + $0x88] sm:$0xff] }
  0x53   : > { %3055 = vmatprep.subr.mxu1 %v4698_v3  ;;  %3037 = vmatpush3.msra.mxu0 %v3454_v1  ;;  %v3940_v1 = vld [vmem:[%s4688_s3 + $0x188] sm:$0xff]  ;;  %4737 = vst [vmem:[#allocation21_spill] sm:$0xff] %v4070_v23 }
  0x54   : > { %3056 = vmatpush3.msra.mxu1 %v3459_v2  ;;  %3038 = vmatprep.subr.mxu0 %v4698_v3  ;;  %v3945_v2 = vld [vmem:[%s4688_s3 + $0x50] sm:$0xff] }
  0x55   : > { %3057 = vmatprep.subr.mxu1 %v4698_v3  ;;  %3039 = vmatpush3.msra.mxu0 %v3472_v4  ;;  %v3952_v4 = vld [vmem:[%s4688_s3 + $0x108] sm:$0xff] }
  0x56   : > { %3058 = vmatpush3.msra.mxu1 %v3477_v5  ;;  %3040 = vmatprep.subr.mxu0 %v4698_v3  ;;  %v3957_v5 = vld [vmem:[%s4688_s3 + $0xc8] sm:$0xff] }
  0x57   : > { %3059 = vmatprep.subr.mxu1 %v4698_v3  ;;  %3041 = vmatpush3.msra.mxu0 %v3487_v6  ;;  %v3964_v6 = vld [vmem:[%s4688_s3 + $0x180] sm:$0xff] }
  0x58   : > { %3060 = vmatpush3.msra.mxu1 %v3492_v7  ;;  %3042 = vmatprep.subr.mxu0 %v4698_v3  ;;  %v3969_v7 = vld [vmem:[%s4688_s3 + $0x48] sm:$0xff] }
  0x59   : > { %3061 = vmatprep.subr.mxu1 %v4698_v3  ;;  %3043 = vmatpush3.msra.mxu0 %v3501_v8  ;;  %v3976_v8 = vld [vmem:[%s4688_s3 + $0x100] sm:$0xff] }
  0x5a   : > { %3062 = vmatpush3.msra.mxu1 %v3506_v9  ;;  %3044 = vmatprep.subr.mxu0 %v4698_v3  ;;  %v3981_v9 = vld [vmem:[%s4688_s3 + $0xc0] sm:$0xff] }
  0x5b   : > { %3063 = vmatprep.subr.mxu1 %v4698_v3  ;;  %3045 = vmatpush3.msra.mxu0 %v3518_v10  ;;  %v3992_v10 = vld [vmem:[%s4688_s3 + $0x40] sm:$0xff] }
  0x5c   : > { %3064 = vmatpush3.msra.mxu1 %v3523_v11  ;;  %3046 = vmatprep.subr.mxu0 %v4698_v3  ;;  %4724 = vst [vmem:[#allocation8_spill] sm:$0xff] %v3992_v10  ;;  %v3999_v11 = vld [vmem:[%s4688_s3 + $0xb8] sm:$0xff] }
  0x5d   : > { %3065 = vmatprep.subr.mxu1 %v4698_v3  ;;  %3047 = vmatpush3.msra.mxu0 %v3532_v12  ;;  %4725 = vst [vmem:[#allocation9_spill] sm:$0xff] %v3999_v11  ;;  %v4005_v12 = vld [vmem:[%s4688_s3 + $0x38] sm:$0xff] }
  0x5e   : > { %3066 = vmatpush3.msra.mxu1 %v3537_v13  ;;  %3048 = vmatprep.subr.mxu0 %v4698_v3  ;;  %4726 = vst [vmem:[#allocation10_spill] sm:$0xff] %v4005_v12  ;;  %v4011_v13 = vld [vmem:[%s4688_s3 + $0xb0] sm:$0xff] }
  0x5f   : > { %3067 = vmatprep.subr.mxu1 %v4698_v3  ;;  %3049 = vmatpush3.msra.mxu0 %v3547_v14  ;;  %4727 = vst [vmem:[#allocation11_spill] sm:$0xff] %v4011_v13  ;;  %v4017_v14 = vld [vmem:[%s4688_s3 + $0x30] sm:$0xff] }
  0x60   : > { %3068 = vmatpush3.msra.mxu1 %v3552_v15  ;;  %3050 = vmatprep.subr.mxu0 %v4698_v3  ;;  %4728 = vst [vmem:[#allocation12_spill] sm:$0xff] %v4017_v14  ;;  %v4023_v15 = vld [vmem:[%s4688_s3 + $0xa8] sm:$0xff] }
  0x61   : > { %3069 = vmatprep.subr.mxu1 %v4698_v3  ;;  %3051 = vmatpush3.msra.mxu0 %v3566_v16  ;;  %4729 = vst [vmem:[#allocation13_spill] sm:$0xff] %v4023_v15  ;;  %v4029_v16 = vld [vmem:[%s4688_s3 + $0x28] sm:$0xff] }
  0x62   : > { %3052 = vmatprep.mubr.msk.f32.mxu0 %vm3333_vm1, %v4698_v3  ;;  %3070 = vmatpush3.msra.mxu1 %v3573_v17  ;;  %4730 = vst [vmem:[#allocation14_spill] sm:$0xff] %v4029_v16  ;;  %v4035_v17 = vld [vmem:[%s4688_s3 + $0xa0] sm:$0xff] }
  0x63   : > { %3071 = vmatprep.mubr.msk.f32.mxu1 %vm3333_vm1, %v4698_v3  ;;  %3053 = vmatmul.mubr.msk.f32.vlgmr.msra.gmra.mxu0 %vm448_vm0, %v971_v24  ;;  %4731 = vst [vmem:[#allocation15_spill] sm:$0xff] %v4035_v17  ;;  %v4076_v24 = vld [vmem:[%s4688_s3 + $0x8] sm:$0xff] }
  0x64   : > { %3072 = vmatmul.mubr.msk.f32.vlgmr.msra.gmra.mxu1 %vm448_vm0, %v2402_v25  ;;  %2639 = vmatprep.subr.mxu0 %v3710_v26  ;;  %4738 = vst [vmem:[#allocation22_spill] sm:$0xff] %v4076_v24  ;;  %v4082_v25 = vld [vmem:[%s4688_s3 + $0x80] sm:$0xff] }
  0x65   : > { %2640 = vmatpush3.msra.mxu0 %v3716_v27  ;;  %2674 = vmatprep.subr.mxu1 %v3817_v44  ;;  %4739 = vst [vmem:[#allocation23_spill] sm:$0xff] %v4082_v25 }
  0x66   : > { %2641 = vmatprep.subr.mxu0 %v3722_v28  ;;  %2675 = vmatpush3.msra.mxu1 %v3829_v46 }
  0x67   : > { %2642 = vmatpush3.msra.mxu0 %v3728_v29  ;;  %2676 = vmatprep.subr.mxu1 %v3841_v48 }
  0x68   : > { %2643 = vmatprep.subr.mxu0 %v3734_v30  ;;  %2677 = vmatpush3.msra.mxu1 %v3853_v50 }
  0x69   : > { %2644 = vmatpush3.msra.mxu0 %v3740_v31  ;;  %2678 = vmatprep.subr.mxu1 %v3865_v52 }
  0x6a   : > { %2645 = vmatprep.subr.mxu0 %v3745_v32  ;;  %2679 = vmatpush3.msra.mxu1 %v3877_v54 }
  0x6b   : > { %2646 = vmatpush3.msra.mxu0 %v3750_v33  ;;  %2680 = vmatprep.subr.mxu1 %v3889_v56 }
  0x6c   : > { %2647 = vmatprep.subr.mxu0 %v3756_v34  ;;  %2681 = vmatpush3.msra.mxu1 %v3901_v58 }
  0x6d   : > { %2648 = vmatpush3.msra.mxu0 %v3762_v35  ;;  %2682 = vmatprep.subr.mxu1 %v3911_v60 }
  0x6e   : > { %2649 = vmatprep.subr.mxu0 %v3768_v36  ;;  %2683 = vmatpush3.msra.mxu1 %v3923_v62 }
  0x6f   : > { %2650 = vmatpush3.msra.mxu0 %v3774_v37  ;;  %2684 = vmatprep.subr.mxu1 %v3935_v0 }
  0x70   : > { %2651 = vmatprep.subr.mxu0 %v3780_v38  ;;  %2685 = vmatpush3.msra.mxu1 %v3945_v2 }
  0x71   : > { %2652 = vmatpush3.msra.mxu0 %v3786_v39  ;;  %2686 = vmatprep.subr.mxu1 %v3957_v5 }
  0x72   : > { %2653 = vmatprep.subr.mxu0 %v3792_v40  ;;  %2687 = vmatpush3.msra.mxu1 %v3969_v7 }
  0x73   : > { %2654 = vmatpush3.msra.mxu0 %v3798_v41  ;;  %2688 = vmatprep.subr.mxu1 %v3981_v9 }
  0x74   : > { %2655 = vmatprep.subr.mxu0 %v3806_v42  ;;  %2689 = vmatpush3.msra.mxu1 %v3992_v10 }
  0x75   : > { %2656 = vmatpush3.msra.mxu0 %v3812_v43  ;;  %2690 = vmatprep.subr.mxu1 %v3999_v11 }
  0x76   : > { %2657 = vmatprep.subr.mxu0 %v3824_v45  ;;  %2691 = vmatpush3.msra.mxu1 %v4005_v12 }
  0x77   : > { %2658 = vmatpush3.msra.mxu0 %v3836_v47  ;;  %2692 = vmatprep.subr.mxu1 %v4011_v13 }
  0x78   : > { %2659 = vmatprep.subr.mxu0 %v3848_v49  ;;  %2693 = vmatpush3.msra.mxu1 %v4017_v14 }
  0x79   : > { %2660 = vmatpush3.msra.mxu0 %v3860_v51  ;;  %2694 = vmatprep.subr.mxu1 %v4023_v15 }
  0x7a   : > { %2661 = vmatprep.subr.mxu0 %v3872_v53  ;;  %2695 = vmatpush3.msra.mxu1 %v4029_v16 }
  0x7b   : > { %2662 = vmatpush3.msra.mxu0 %v3884_v55  ;;  %2696 = vmatprep.subr.mxu1 %v4035_v17 }
  0x7c   : > { %2663 = vmatprep.subr.mxu0 %v3894_v57  ;;  %2697 = vmatpush3.msra.mxu1 %v4041_v18 }
  0x7d   : > { %2664 = vmatpush3.msra.mxu0 %v3906_v59  ;;  %2698 = vmatprep.subr.mxu1 %v4047_v19 }
  0x7e   : > { %2665 = vmatprep.subr.mxu0 %v3918_v61  ;;  %2699 = vmatpush3.msra.mxu1 %v4053_v20 }
  0x7f   : > { %2666 = vmatpush3.msra.mxu0 %v3928_v63  ;;  %2700 = vmatprep.subr.mxu1 %v4059_v21 }
  0x80   : > { %2667 = vmatprep.subr.mxu0 %v3940_v1  ;;  %2701 = vmatpush3.msra.mxu1 %v4064_v22  ;;  %v2375_v22 = vld [vmem:[%s4741_s2] ss:$0 sm:$0xff]  ;;  %s3276_s2 = scalar_lea.vmem %s3275_s1, 32 }
  0x81   : > { %2668 = vmatpush3.msra.mxu0 %v3952_v4  ;;  %2702 = vmatprep.subr.mxu1 %v4070_v23  ;;  %p3278_p1 = scmp.lt.s32.totalorder %s3276_s2, %s3270_s0 }
  0x82   : > { %2669 = vmatprep.subr.mxu0 %v3964_v6  ;;  %2703 = vmatpush3.msra.mxu1 %v4076_v24 }
  0x83   : > { %2670 = vmatpush3.msra.mxu0 %v3976_v8  ;;  %2704 = vmatprep.subr.mxu1 %v4082_v25  ;;  %p3279_p2 = por %p3278_p1, %p3277_p0 }
  0x84   : > { %2709 = vmatprep.subr.mxu0 %v3710_v26  ;;  %v4088_v26 = vld [vmem:[%s4688_s3] sm:$0xff] }
  0x85   : > { %4740 = vst [vmem:[#allocation24_spill] sm:$0xff] %v4088_v26  ;;  %2705 = vmatpush3.msra.mxu1 %v4088_v26  ;;  %p3280_p3 = pnand %p3279_p2, %p3273_p13 }
  0x86   : > { %2744 = vmatprep.subr.mxu1 %v3817_v44 }
  0xed   : > { %v518_v3 = vpop.f32.mrf.mxu0 }
  0xee   : > { %v591_v23 = vpop.f32.mrf.mxu1 }
  0xef   : > { %v592_v21 = vadd.f32 %v591_v23, %v518_v3  ;;  %v2940_v20 = vpop.f32.mrf.mxu0 }
  0xf0   : > { %v2959_v24 = vpop.f32.mrf.mxu1 }
  0xf1   : > { %v602_v19 = vadd.f32 %v2375_v22, %v592_v21 }
  0xf3   : > { %vm603_vm2 = vcmp.ge.f32.partialorder %v602_v19, 0.0  ;;  %v604_v18 = vmul.f32 0.2, %v602_v19 }
  0xf5   : > { %v605_v17 = vsel %vm603_vm2, %v602_v19, %v604_v18 }
  0xf6   : > { %606 = vst [vmem:[#allocation2] sm:$0xf] %v605_v17 }
  0xfd   : > { %v1142_v16 = vld [vmem:[#allocation2] sm:$0xf] }
  0xfe   : > { %1344 = vmatprep.mubr.f32.mxu1 %v1142_v16  ;;  %v1397_v16 = vld [vmem:[#allocation2] sm:$0x1e] }
  0xff   : > { %v695_v25 = vpop.f32.mrf.mxu0 }
 0x100   : > { %v768_v26 = vpop.f32.mrf.mxu1 }
 0x101   : > { %v769_v15 = vadd.f32 %v768_v26, %v695_v25  ;;  %v2978_v44 = vpop.f32.mrf.mxu0 }
 0x102   : > { %v2997_v14 = vpop.f32.mrf.mxu1 }
 0x103   : > { %v779_v13 = vadd.f32 %v2375_v22, %v769_v15  ;;  %v1433_v14 = vrot.slane %v1397_v16, 1  ;;  %v1601_v16 = vld [vmem:[%s4690_s5 + $0x40] sm:$0xff] }
 0x105   : > { %vm780_vm3 = vcmp.ge.f32.partialorder %v779_v13, 0.0  ;;  %v781_v12 = vmul.f32 0.2, %v779_v13 }
 0x107   : > { %v782_v11 = vsel %vm780_vm3, %v779_v13, %v781_v12 }
 0x108   : > { %784 = vst [vmem:[#allocation2 + $0x18] sm:$0xf] %v782_v11 }
 0x10f   : > { %v1175_v25 = vld [vmem:[#allocation2 + $0x18] sm:$0xf] }
 0x111   : > { %v873_v3 = vpop.f32.mrf.mxu0 }
 0x112   : > { %v946_v20 = vpop.f32.mrf.mxu1 }
 0x113   : > { %v947_v23 = vadd.f32 %v946_v20, %v873_v3  ;;  %v3016_v21 = vpop.f32.mrf.mxu0  ;;  %v1618_v20 = vld [vmem:[%s4690_s5 + $0xc8] sm:$0xff] }
 0x114   : > { %v3035_v24 = vpop.f32.mrf.mxu1  ;;  %v1602_v21 = vld [vmem:[%s4690_s5 + $0x48] sm:$0xff] }
 0x115   : > { %v957_v10 = vadd.f32 %v2375_v22, %v947_v23  ;;  %v2490_v23 = vld [vmem:[%s4690_s5 + $0x150] sm:$0xff]  ;;  %v2505_v24 = vld [vmem:[%s4690_s5 + $0x1c8] sm:$0xff] }
 0x117   : > { %vm958_vm4 = vcmp.ge.f32.partialorder %v957_v10, 0.0  ;;  %v959_v17 = vmul.f32 0.2, %v957_v10 }
 0x119   : > { %v960_v18 = vsel %vm958_vm4, %v957_v10, %v959_v17  ;;  %v1617_v17 = vld [vmem:[%s4690_s5 + $0xc0] sm:$0xff] }
 0x11a   : > { %961 = vst [vmem:[#allocation2 + $0x8] sm:$0xf] %v960_v18  ;;  %v2489_v18 = vld [vmem:[%s4690_s5 + $0x148] sm:$0xff] }
 0x121   : > { %v1176_v19 = vld [vmem:[#allocation2 + $0x8] sm:$0xf] }
 0x122   : > { %1274 = vmatprep.mubr.f32.mxu0 %v1176_v19  ;;  %v2504_v19 = vld [vmem:[%s4690_s5 + $0x1c0] sm:$0xff] }
 0x123   : > { %1275 = vmatmul.mubr.f32.vlgmr.msra.gmra.mxu0 %v1175_v25  ;;  %v1049_v15 = vpop.f32.mrf.mxu0  ;;  %v1616_v25 = vld [vmem:[%s4690_s5 + $0xb8] sm:$0xff] }
 0x124   : > { %v1122_v26 = vpop.f32.mrf.mxu1  ;;  %2710 = vmatpush3.msra.mxu0 %v3716_v27  ;;  %1500 = vmatprep.mubr.f32.mxu0 %v1433_v14  ;;  %v2488_v14 = vld [vmem:[%s4690_s5 + $0x140] sm:$0xff] }
 0x125   : > { %v1123_v11 = vadd.f32 %v1122_v26, %v1049_v15  ;;  %2711 = vmatprep.subr.mxu0 %v3722_v28  ;;  %v3054_v12 = vpop.f32.mrf.mxu0  ;;  %v1600_v15 = vld [vmem:[%s4690_s5 + $0x38] sm:$0xff] }
 0x126   : > { %v3073_v13 = vpop.f32.mrf.mxu1  ;;  %2712 = vmatpush3.msra.mxu0 %v3728_v29  ;;  %v1363_v29 = vld [vmem:[#allocation2 + $0x8] sm:$0xf]  ;;  %v2503_v26 = vld [vmem:[%s4690_s5 + $0x1b8] sm:$0xff] }
 0x127   : > { %v1133_v10 = vadd.f32 %v2375_v22, %v1123_v11  ;;  %2713 = vmatprep.subr.mxu0 %v3734_v30  ;;  %v2506_v22 = vld [vmem:[%s4690_s5 + $0x1d0] sm:$0xff]  ;;  %v2487_v12 = vld [vmem:[%s4690_s5 + $0x138] sm:$0xff] }
 0x128   : > { %2714 = vmatpush3.msra.mxu0 %v3740_v31  ;;  %v1615_v11 = vld [vmem:[%s4690_s5 + $0xb0] sm:$0xff] }
 0x129   : > { %vm1134_vm5 = vcmp.ge.f32.partialorder %v1133_v10, 0.0  ;;  %v1135_v44 = vmul.f32 0.2, %v1133_v10  ;;  %2715 = vmatprep.subr.mxu0 %v3745_v32  ;;  %v4742_v32 = vld [vmem:[#allocation8_spill] sm:$0xff] }
 0x12a   : > { %2716 = vmatpush3.msra.mxu0 %v3750_v33  ;;  %v4743_v33 = vld [vmem:[#allocation9_spill] sm:$0xff]  ;;  %v1599_v13 = vld [vmem:[%s4690_s5 + $0x30] sm:$0xff] }
 0x12b   : > { %v1136_v27 = vsel %vm1134_vm5, %v1133_v10, %v1135_v44  ;;  %2717 = vmatprep.subr.mxu0 %v3756_v34  ;;  %v4744_v34 = vld [vmem:[#allocation10_spill] sm:$0xff]  ;;  %v2502_v10 = vld [vmem:[%s4690_s5 + $0x1b0] sm:$0xff] }
 0x12c   : > { %v1138_v3 = vrot.slane %v1136_v27, 7  ;;  %2718 = vmatpush3.msra.mxu0 %v3762_v35  ;;  %v4745_v35 = vld [vmem:[#allocation11_spill] sm:$0xff] }
 0x12d   : > { %2719 = vmatprep.subr.mxu0 %v3768_v36  ;;  %v4746_v36 = vld [vmem:[#allocation12_spill] sm:$0xff]  ;;  %v1614_v44 = vld [vmem:[%s4690_s5 + $0xa8] sm:$0xff] }
 0x12e   : > { %1140 = vst [vmem:[#allocation2 + $0x10] sm:$0x1e] %v1138_v3  ;;  %2720 = vmatpush3.msra.mxu0 %v3774_v37  ;;  %v4747_v37 = vld [vmem:[#allocation13_spill] sm:$0xff]  ;;  %v2486_v27 = vld [vmem:[%s4690_s5 + $0x130] sm:$0xff]  ;;  %v1598_v3 = vld [vmem:[%s4690_s5 + $0x28] sm:$0xff] }
 0x12f   : > { %2721 = vmatprep.subr.mxu0 %v3780_v38  ;;  %v4748_v38 = vld [vmem:[#allocation14_spill] sm:$0xff] }
 0x130   : > { %2722 = vmatpush3.msra.mxu0 %v3786_v39  ;;  %v4749_v39 = vld [vmem:[#allocation15_spill] sm:$0xff] }
 0x131   : > { %2723 = vmatprep.subr.mxu0 %v3792_v40  ;;  %v4750_v40 = vld [vmem:[#allocation16_spill] sm:$0xff] }
 0x132   : > { %2724 = vmatpush3.msra.mxu0 %v3798_v41  ;;  %v4751_v41 = vld [vmem:[#allocation17_spill] sm:$0xff] }
 0x133   : > { %2725 = vmatprep.subr.mxu0 %v3806_v42  ;;  %v4752_v42 = vld [vmem:[#allocation18_spill] sm:$0xff] }
 0x134   : > { %2726 = vmatpush3.msra.mxu0 %v3812_v43  ;;  %v4753_v43 = vld [vmem:[#allocation19_spill] sm:$0xff] }
 0x135   : > { %v1141_v28 = vld [vmem:[#allocation2 + $0x10] sm:$0xf]  ;;  %2727 = vmatprep.subr.mxu0 %v3824_v45 }
 0x136   : > { %1345 = vmatmul.mubr.f32.vlgmr.msra.gmra.mxu1 %v1141_v28  ;;  %2728 = vmatpush3.msra.mxu0 %v3836_v47  ;;  %v1396_v30 = vld [vmem:[#allocation2 + $0x10] sm:$0x1e]  ;;  %v4756_v47 = vld [vmem:[#allocation22_spill] sm:$0xff] }
 0x137   : > { %2745 = vmatpush3.msra.mxu1 %v3829_v46  ;;  %1570 = vmatprep.mubr.f32.mxu1 %v1363_v29  ;;  %v1432_v31 = vrot.slane %v1396_v30, 1  ;;  %v4754_v45 = vld [vmem:[#allocation20_spill] sm:$0xff]  ;;  %v4755_v46 = vld [vmem:[#allocation21_spill] sm:$0xff]  ;;  %v2501_v28 = vld [vmem:[%s4690_s5 + $0x1a8] sm:$0xff] }
 0x138   : > { %2746 = vmatprep.subr.mxu1 %v3841_v48  ;;  %2729 = vmatprep.subr.mxu0 %v3848_v49  ;;  %v4757_v48 = vld [vmem:[#allocation23_spill] sm:$0xff]  ;;  %v4758_v49 = vld [vmem:[#allocation24_spill] sm:$0xff]  ;;  %v1613_v29 = vld [vmem:[%s4690_s5 + $0xa0] sm:$0xff] }
 0x139   : > { %2747 = vmatpush3.msra.mxu1 %v3853_v50  ;;  %2730 = vmatpush3.msra.mxu0 %v3860_v51  ;;  %v1362_v50 = vld [vmem:[#allocation2 + $0x18] sm:$0xf]  ;;  %v2485_v30 = vld [vmem:[%s4690_s5 + $0x128] sm:$0xff] }
 0x13a   : > { %2748 = vmatprep.subr.mxu1 %v3865_v52  ;;  %2731 = vmatprep.subr.mxu0 %v3872_v53  ;;  %v1624_v51 = vld [vmem:[%s4690_s5 + $0xf8] sm:$0xff] }
 0x13b   : > { %2749 = vmatpush3.msra.mxu1 %v3877_v54  ;;  %2732 = vmatpush3.msra.mxu0 %v3884_v55  ;;  %v1608_v52 = vld [vmem:[%s4690_s5 + $0x78] sm:$0xff]  ;;  %v1623_v54 = vld [vmem:[%s4690_s5 + $0xf0] sm:$0xff] }
 0x13c   : > { %2750 = vmatprep.subr.mxu1 %v3889_v56  ;;  %2733 = vmatprep.subr.mxu0 %v3894_v57  ;;  %v2511_v53 = vld [vmem:[%s4690_s5 + $0x1f8] sm:$0xff]  ;;  %v1607_v56 = vld [vmem:[%s4690_s5 + $0x70] sm:$0xff] }
 0x13d   : > { %2751 = vmatpush3.msra.mxu1 %v3901_v58  ;;  %2734 = vmatpush3.msra.mxu0 %v3906_v59  ;;  %v2495_v55 = vld [vmem:[%s4690_s5 + $0x178] sm:$0xff]  ;;  %v2510_v57 = vld [vmem:[%s4690_s5 + $0x1f0] sm:$0xff]  ;;  %v1622_v58 = vld [vmem:[%s4690_s5 + $0xe8] sm:$0xff] }
 0x13e   : > { %2752 = vmatprep.subr.mxu1 %v3911_v60  ;;  %2735 = vmatprep.subr.mxu0 %v3918_v61  ;;  %v2494_v59 = vld [vmem:[%s4690_s5 + $0x170] sm:$0xff]  ;;  %v1606_v60 = vld [vmem:[%s4690_s5 + $0x68] sm:$0xff] }
 0x13f   : > { %2753 = vmatpush3.msra.mxu1 %v3923_v62  ;;  %2736 = vmatpush3.msra.mxu0 %v3928_v63  ;;  %v2509_v61 = vld [vmem:[%s4690_s5 + $0x1e8] sm:$0xff]  ;;  %v1621_v62 = vld [vmem:[%s4690_s5 + $0xe0] sm:$0xff] }
 0x140   : > { %2754 = vmatprep.subr.mxu1 %v3935_v0  ;;  %2737 = vmatprep.subr.mxu0 %v3940_v1  ;;  %v2493_v63 = vld [vmem:[%s4690_s5 + $0x168] sm:$0xff]  ;;  %v1605_v0 = vld [vmem:[%s4690_s5 + $0x60] sm:$0xff] }
 0x141   : > { %2755 = vmatpush3.msra.mxu1 %v3945_v2  ;;  %2738 = vmatpush3.msra.mxu0 %v3952_v4  ;;  %v2508_v1 = vld [vmem:[%s4690_s5 + $0x1e0] sm:$0xff]  ;;  %v1620_v2 = vld [vmem:[%s4690_s5 + $0xd8] sm:$0xff] }
 0x142   : > { %2756 = vmatprep.subr.mxu1 %v3957_v5  ;;  %2739 = vmatprep.subr.mxu0 %v3964_v6  ;;  %v2492_v4 = vld [vmem:[%s4690_s5 + $0x160] sm:$0xff]  ;;  %v1604_v5 = vld [vmem:[%s4690_s5 + $0x58] sm:$0xff] }
 0x143   : > { %2757 = vmatpush3.msra.mxu1 %v3969_v7  ;;  %2740 = vmatpush3.msra.mxu0 %v3976_v8  ;;  %v2507_v6 = vld [vmem:[%s4690_s5 + $0x1d8] sm:$0xff]  ;;  %v1619_v7 = vld [vmem:[%s4690_s5 + $0xd0] sm:$0xff] }
 0x144   : > { %2758 = vmatprep.subr.mxu1 %v3981_v9  ;;  %1501 = vmatmul.mubr.f32.vlgmr.msra.gmra.mxu0 %v1432_v31  ;;  %v2491_v8 = vld [vmem:[%s4690_s5 + $0x158] sm:$0xff]  ;;  %v1603_v9 = vld [vmem:[%s4690_s5 + $0x50] sm:$0xff]  ;;  %v1597_v31 = vld [vmem:[%s4690_s5 + $0x20] sm:$0xff] }
 0x145   : > { %2759 = vmatpush3.msra.mxu1 %v4742_v32  ;;  %2779 = vmatprep.subr.mxu0 %v2511_v53  ;;  %v2500_v32 = vld [vmem:[%s4690_s5 + $0x1a0] sm:$0xff] }
 0x146   : > { %2760 = vmatprep.subr.mxu1 %v4743_v33  ;;  %2780 = vmatpush3.msra.mxu0 %v2495_v55  ;;  %v1612_v33 = vld [vmem:[%s4690_s5 + $0x98] sm:$0xff] }
 0x147   : > { %2761 = vmatpush3.msra.mxu1 %v4744_v34  ;;  %2781 = vmatprep.subr.mxu0 %v2510_v57  ;;  %v2484_v34 = vld [vmem:[%s4690_s5 + $0x120] sm:$0xff] }
 0x148   : > { %2762 = vmatprep.subr.mxu1 %v4745_v35  ;;  %2782 = vmatpush3.msra.mxu0 %v2494_v59  ;;  %v1596_v35 = vld [vmem:[%s4690_s5 + $0x18] sm:$0xff] }
 0x149   : > { %2763 = vmatpush3.msra.mxu1 %v4746_v36  ;;  %2783 = vmatprep.subr.mxu0 %v2509_v61  ;;  %v2499_v36 = vld [vmem:[%s4690_s5 + $0x198] sm:$0xff] }
 0x14a   : > { %2764 = vmatprep.subr.mxu1 %v4747_v37  ;;  %2784 = vmatpush3.msra.mxu0 %v2493_v63  ;;  %v1611_v37 = vld [vmem:[%s4690_s5 + $0x90] sm:$0xff] }
 0x14b   : > { %2765 = vmatpush3.msra.mxu1 %v4748_v38  ;;  %2785 = vmatprep.subr.mxu0 %v2508_v1  ;;  %v2483_v38 = vld [vmem:[%s4690_s5 + $0x118] sm:$0xff] }
 0x14c   : > { %2766 = vmatprep.subr.mxu1 %v4749_v39  ;;  %2786 = vmatpush3.msra.mxu0 %v2492_v4  ;;  %v1595_v39 = vld [vmem:[%s4690_s5 + $0x10] sm:$0xff] }
 0x14d   : > { %2767 = vmatpush3.msra.mxu1 %v4750_v40  ;;  %2787 = vmatprep.subr.mxu0 %v2507_v6  ;;  %v2498_v40 = vld [vmem:[%s4690_s5 + $0x190] sm:$0xff] }
 0x14e   : > { %2768 = vmatprep.subr.mxu1 %v4751_v41  ;;  %2788 = vmatpush3.msra.mxu0 %v2491_v8  ;;  %v1610_v41 = vld [vmem:[%s4690_s5 + $0x88] sm:$0xff] }
 0x14f   : > { %2769 = vmatpush3.msra.mxu1 %v4752_v42  ;;  %2789 = vmatprep.subr.mxu0 %v2506_v22  ;;  %v2482_v42 = vld [vmem:[%s4690_s5 + $0x110] sm:$0xff] }
 0x150   : > { %2770 = vmatprep.subr.mxu1 %v4753_v43  ;;  %2790 = vmatpush3.msra.mxu0 %v2490_v23  ;;  %v1594_v43 = vld [vmem:[%s4690_s5 + $0x8] sm:$0xff] }
 0x151   : > { %2771 = vmatpush3.msra.mxu1 %v4754_v45  ;;  %2791 = vmatprep.subr.mxu0 %v2505_v24  ;;  %v2497_v45 = vld [vmem:[%s4690_s5 + $0x188] sm:$0xff]  ;;  %v2528_v24 = vld [vmem:[%s4692_s7 + $0xf8] sm:$0xff] }
 0x152   : > { %2772 = vmatprep.subr.mxu1 %v4755_v46  ;;  %2792 = vmatpush3.msra.mxu0 %v2489_v18  ;;  %v1609_v46 = vld [vmem:[%s4690_s5 + $0x80] sm:$0xff] }
 0x153   : > { %2773 = vmatpush3.msra.mxu1 %v4756_v47  ;;  %2793 = vmatprep.subr.mxu0 %v2504_v19  ;;  %v2481_v47 = vld [vmem:[%s4690_s5 + $0x108] sm:$0xff]  ;;  %v1833_v19 = vld [vmem:[%s4692_s7 + $0x78] sm:$0xff] }
 0x154   : > { %2774 = vmatprep.subr.mxu1 %v4757_v48  ;;  %2794 = vmatpush3.msra.mxu0 %v2488_v14  ;;  %v1593_v48 = vld [vmem:[%s4690_s5] sm:$0xff]  ;;  %v1832_v14 = vld [vmem:[%s4692_s7 + $0x70] sm:$0xff] }
 0x155   : > { %2775 = vmatpush3.msra.mxu1 %v4758_v49  ;;  %2795 = vmatprep.subr.mxu0 %v2503_v26  ;;  %v2496_v49 = vld [vmem:[%s4690_s5 + $0x180] sm:$0xff]  ;;  %v1831_v26 = vld [vmem:[%s4692_s7 + $0x68] sm:$0xff] }
 0x156   : > { %1571 = vmatmul.mubr.f32.vlgmr.msra.gmra.mxu1 %v1362_v50  ;;  %2814 = vmatprep.subr.mxu1 %v1624_v51  ;;  %v2480_v50 = vld [vmem:[%s4690_s5 + $0x100] sm:$0xff]  ;;  %v4759_v51 = vmov 0.0  }
 0x157   : > { %2815 = vmatpush3.msra.mxu1 %v1608_v52  ;;  %2796 = vmatpush3.msra.mxu0 %v2487_v12  ;;  %v1830_v12 = vld [vmem:[%s4692_s7 + $0x60] sm:$0xff] }
 0x158   : > { %2816 = vmatprep.subr.mxu1 %v1623_v54  ;;  %2797 = vmatprep.subr.mxu0 %v2502_v10  ;;  %v1829_v10 = vld [vmem:[%s4692_s7 + $0x58] sm:$0xff] }
 0x159   : > { %2817 = vmatpush3.msra.mxu1 %v1607_v56  ;;  %2798 = vmatpush3.msra.mxu0 %v2486_v27  ;;  %v1828_v27 = vld [vmem:[%s4692_s7 + $0x50] sm:$0xff] }
 0x15a   : > { %2818 = vmatprep.subr.mxu1 %v1622_v58  ;;  %2799 = vmatprep.subr.mxu0 %v2501_v28  ;;  %v2446_v58 = vld [vmem:[%s4689_s4] ss:$0 sm:$0xff]  ;;  %v1827_v28 = vld [vmem:[%s4692_s7 + $0x48] sm:$0xff] }
 0x15b   : > { %2819 = vmatpush3.msra.mxu1 %v1606_v60  ;;  %2800 = vmatpush3.msra.mxu0 %v2485_v30  ;;  %v1826_v30 = vld [vmem:[%s4692_s7 + $0x40] sm:$0xff] }
 0x15c   : > { %2820 = vmatprep.subr.mxu1 %v1621_v62  ;;  %2801 = vmatprep.subr.mxu0 %v2500_v32  ;;  %v1824_v32 = vld [vmem:[%s4692_s7 + $0x30] sm:$0xff] }
 0x15d   : > { %2821 = vmatpush3.msra.mxu1 %v1605_v0  ;;  %2802 = vmatpush3.msra.mxu0 %v2484_v34  ;;  %v1823_v34 = vld [vmem:[%s4692_s7 + $0x28] sm:$0xff] }
 0x15e   : > { %2822 = vmatprep.subr.mxu1 %v1620_v2  ;;  %2803 = vmatprep.subr.mxu0 %v2499_v36  ;;  %v1822_v36 = vld [vmem:[%s4692_s7 + $0x20] sm:$0xff] }
 0x15f   : > { %2823 = vmatpush3.msra.mxu1 %v1604_v5  ;;  %2804 = vmatpush3.msra.mxu0 %v2483_v38  ;;  %v1821_v38 = vld [vmem:[%s4692_s7 + $0x18] sm:$0xff] }
 0x160   : > { %2824 = vmatprep.subr.mxu1 %v1619_v7  ;;  %2805 = vmatprep.subr.mxu0 %v2498_v40  ;;  %v1820_v40 = vld [vmem:[%s4692_s7 + $0x10] sm:$0xff] }
 0x161   : > { %2825 = vmatpush3.msra.mxu1 %v1603_v9  ;;  %2806 = vmatpush3.msra.mxu0 %v2482_v42  ;;  %v1819_v42 = vld [vmem:[%s4692_s7 + $0x8] sm:$0xff] }
 0x162   : > { %2826 = vmatprep.subr.mxu1 %v1618_v20  ;;  %2807 = vmatprep.subr.mxu0 %v2497_v45  ;;  %v1818_v45 = vld [vmem:[%s4692_s7] sm:$0xff] }
 0x163   : > { %2827 = vmatpush3.msra.mxu1 %v1602_v21  ;;  %2808 = vmatpush3.msra.mxu0 %v2481_v47  ;;  %v2513_v47 = vld [vmem:[%s4692_s7 + $0x80] sm:$0xff] }
 0x164   : > { %2828 = vmatprep.subr.mxu1 %v1617_v17  ;;  %2809 = vmatprep.subr.mxu0 %v2496_v49 }
 0x165   : > { %2829 = vmatpush3.msra.mxu1 %v1601_v16  ;;  %2810 = vmatpush3.msra.mxu0 %v2480_v50 }
 0x166   : > { %2830 = vmatprep.subr.mxu1 %v1616_v25  ;;  %3074 = vmatprep.subr.mxu0 %v4759_v51  ;;  %v2527_v25 = vld [vmem:[%s4692_s7 + $0xf0] sm:$0xff] }
 0x167   : > { %2831 = vmatpush3.msra.mxu1 %v1600_v15  ;;  %v2526_v15 = vld [vmem:[%s4692_s7 + $0xe8] sm:$0xff] }
 0x168   : > { %2832 = vmatprep.subr.mxu1 %v1615_v11  ;;  %v2525_v11 = vld [vmem:[%s4692_s7 + $0xe0] sm:$0xff] }
 0x169   : > { %2833 = vmatpush3.msra.mxu1 %v1599_v13  ;;  %v2524_v13 = vld [vmem:[%s4692_s7 + $0xd8] sm:$0xff] }
 0x16a   : > { %2834 = vmatprep.subr.mxu1 %v1614_v44  ;;  %v2523_v44 = vld [vmem:[%s4692_s7 + $0xd0] sm:$0xff] }
 0x16b   : > { %2835 = vmatpush3.msra.mxu1 %v1598_v3  ;;  %v2522_v3 = vld [vmem:[%s4692_s7 + $0xc8] sm:$0xff] }
 0x16c   : > { %2836 = vmatprep.subr.mxu1 %v1613_v29  ;;  %v2521_v29 = vld [vmem:[%s4692_s7 + $0xc0] sm:$0xff] }
 0x16d   : > { %2837 = vmatpush3.msra.mxu1 %v1597_v31  ;;  %v1825_v31 = vld [vmem:[%s4692_s7 + $0x38] sm:$0xff] }
 0x16e   : > { %2838 = vmatprep.subr.mxu1 %v1612_v33  ;;  %v2520_v33 = vld [vmem:[%s4692_s7 + $0xb8] sm:$0xff] }
 0x16f   : > { %2839 = vmatpush3.msra.mxu1 %v1596_v35  ;;  %v2519_v35 = vld [vmem:[%s4692_s7 + $0xb0] sm:$0xff] }
 0x170   : > { %2840 = vmatprep.subr.mxu1 %v1611_v37  ;;  %v2518_v37 = vld [vmem:[%s4692_s7 + $0xa8] sm:$0xff] }
 0x171   : > { %2841 = vmatpush3.msra.mxu1 %v1595_v39  ;;  %v2517_v39 = vld [vmem:[%s4692_s7 + $0xa0] sm:$0xff] }
 0x172   : > { %2842 = vmatprep.subr.mxu1 %v1610_v41  ;;  %v2516_v41 = vld [vmem:[%s4692_s7 + $0x98] sm:$0xff] }
 0x173   : > { %2843 = vmatpush3.msra.mxu1 %v1594_v43  ;;  %v2515_v43 = vld [vmem:[%s4692_s7 + $0x90] sm:$0xff] }
 0x174   : > { %2844 = vmatprep.subr.mxu1 %v1609_v46  ;;  %v2514_v46 = vld [vmem:[%s4692_s7 + $0x88] sm:$0xff] }
 0x175   : > { %2845 = vmatpush3.msra.mxu1 %v1593_v48 }
 0x176   : > { %3109 = vmatprep.subr.mxu1 %v4759_v51 }
 0x1e3   : > { %v2671_v52 = vpop.f32.mrf.mxu0 }
 0x1e5   : > { %v2672_v53 = vpop.f32.mrf.mxu0 }
 0x1e6   : > { %v2673_v56 = vadd.f32 %v2672_v53, %v2671_v52 }
 0x1f6   : > { %v2706_v54 = vpop.f32.mrf.mxu1 }
 0x1f8   : > { %v2707_v55 = vpop.f32.mrf.mxu1 }
 0x1f9   : > { %v2708_v57 = vadd.f32 %v2707_v55, %v2706_v54  ;;  %v2512_v55 = vld [vmem:[%s4691_s6] ss:$0 sm:$0xff] }
 0x1fb   : > { %v1347_v59 = vadd.f32 %v2708_v57, %v2673_v56 }
 0x1fd   : > { %v1357_v60 = vadd.f32 %v2446_v58, %v1347_v59  ;;  %v2544_v59 = vld [vmem:[%s4692_s7 + $0x178] sm:$0xff] }
 0x1ff   : > { %vm1358_vm6 = vcmp.ge.f32.partialorder %v1357_v60, 0.0  ;;  %v1359_v61 = vmul.f32 0.2, %v1357_v60 }
 0x201   : > { %v1360_v62 = vsel %vm1358_vm6, %v1357_v60, %v1359_v61 }
 0x202   : > { %1361 = vst [vmem:[#allocation3 + $0x8] sm:$0xf] %v1360_v62  ;;  %v2543_v62 = vld [vmem:[%s4692_s7 + $0x170] sm:$0xff] }
 0x204   : > { %v2741_v2 = vpop.f32.mrf.mxu0 }
 0x206   : > { %v2742_v4 = vpop.f32.mrf.mxu0 }
 0x207   : > { %v2743_v7 = vadd.f32 %v2742_v4, %v2741_v2  ;;  %v2541_v2 = vld [vmem:[%s4692_s7 + $0x160] sm:$0xff]  ;;  %v2558_v4 = vld [vmem:[%s4692_s7 + $0x1e8] sm:$0xff] }
 0x209   : > { %v1592_v63 = vld [vmem:[#allocation3 + $0x8] sm:$0xf] }
 0x20a   : > { %v1626_v0 = vld [vmem:[#allocation3 + $0x8] sm:$0x1e]  ;;  %1800 = vmatprep.mubr.f32.mxu1 %v1592_v63  ;;  %v2560_v63 = vld [vmem:[%s4692_s7 + $0x1f8] sm:$0xff] }
 0x20b   : > { %v1663_v1 = vrot.slane %v1626_v0, 1  ;;  %v2542_v0 = vld [vmem:[%s4692_s7 + $0x168] sm:$0xff] }
 0x20d   : > { %1730 = vmatprep.mubr.f32.mxu0 %v1663_v1  ;;  %v2559_v1 = vld [vmem:[%s4692_s7 + $0x1f0] sm:$0xff] }
 0x216   : > { %v2776_v5 = vpop.f32.mrf.mxu1 }
 0x218   : > { %v2777_v6 = vpop.f32.mrf.mxu1 }
 0x219   : > { %v2778_v8 = vadd.f32 %v2777_v6, %v2776_v5  ;;  %v2540_v5 = vld [vmem:[%s4692_s7 + $0x158] sm:$0xff]  ;;  %v2557_v6 = vld [vmem:[%s4692_s7 + $0x1e0] sm:$0xff] }
 0x21b   : > { %v1573_v9 = vadd.f32 %v2778_v8, %v2743_v7  ;;  %v2539_v7 = vld [vmem:[%s4692_s7 + $0x150] sm:$0xff]  ;;  %v2556_v8 = vld [vmem:[%s4692_s7 + $0x1d8] sm:$0xff] }
 0x21d   : > { %v1583_v22 = vadd.f32 %v2446_v58, %v1573_v9  ;;  %v2538_v9 = vld [vmem:[%s4692_s7 + $0x148] sm:$0xff] }
 0x21f   : > { %vm1584_vm7 = vcmp.ge.f32.partialorder %v1583_v22, 0.0  ;;  %v1585_v20 = vmul.f32 0.2, %v1583_v22 }
 0x221   : > { %v1586_v23 = vsel %vm1584_vm7, %v1583_v22, %v1585_v20  ;;  %v2555_v22 = vld [vmem:[%s4692_s7 + $0x1d0] sm:$0xff]  ;;  %v2537_v20 = vld [vmem:[%s4692_s7 + $0x140] sm:$0xff] }
 0x222   : > { %v1588_v21 = vrot.slane %v1586_v23, 7  ;;  %v2554_v23 = vld [vmem:[%s4692_s7 + $0x1c8] sm:$0xff] }
 0x224   : > { %1590 = vst [vmem:[#allocation3] sm:$0x1e] %v1588_v21  ;;  %v2536_v21 = vld [vmem:[%s4692_s7 + $0x138] sm:$0xff] }
 0x22b   : > { %v1591_v17 = vld [vmem:[#allocation3] sm:$0xf] }
 0x22c   : > { %v1625_v18 = vld [vmem:[#allocation3] sm:$0x1e]  ;;  %1801 = vmatmul.mubr.f32.vlgmr.msra.gmra.mxu1 %v1591_v17  ;;  %v2535_v17 = vld [vmem:[%s4692_s7 + $0x130] sm:$0xff] }
 0x22d   : > { %v1662_v16 = vrot.slane %v1625_v18, 1  ;;  %3110 = vmatpush3.msra.mxu1 %v2528_v24  ;;  %3141 = vmatprep.mubr.msk.f32.mxu1 %vm3333_vm1, %v4759_v51  ;;  %v2553_v24 = vld [vmem:[%s4692_s7 + $0x1c0] sm:$0xff]  ;;  %v2552_v18 = vld [vmem:[%s4692_s7 + $0x1b8] sm:$0xff] }
 0x22e   : > { %3111 = vmatprep.subr.mxu1 %v4759_v51 }
 0x22f   : > { %1731 = vmatmul.mubr.f32.vlgmr.msra.gmra.mxu0 %v1662_v16  ;;  %3112 = vmatpush3.msra.mxu1 %v2527_v25  ;;  %v2534_v16 = vld [vmem:[%s4692_s7 + $0x128] sm:$0xff]  ;;  %v2533_v25 = vld [vmem:[%s4692_s7 + $0x120] sm:$0xff] }
 0x230   : > { %3075 = vmatpush3.msra.mxu0 %v1833_v19  ;;  %3113 = vmatprep.subr.mxu1 %v4759_v51  ;;  %v2551_v19 = vld [vmem:[%s4692_s7 + $0x1b0] sm:$0xff] }
 0x231   : > { %3076 = vmatprep.subr.mxu0 %v4759_v51  ;;  %3114 = vmatpush3.msra.mxu1 %v2526_v15  ;;  %v2532_v15 = vld [vmem:[%s4692_s7 + $0x118] sm:$0xff] }
 0x232   : > { %3077 = vmatpush3.msra.mxu0 %v1832_v14  ;;  %3115 = vmatprep.subr.mxu1 %v4759_v51  ;;  %v2550_v14 = vld [vmem:[%s4692_s7 + $0x1a8] sm:$0xff] }
 0x233   : > { %3078 = vmatprep.subr.mxu0 %v4759_v51  ;;  %3116 = vmatpush3.msra.mxu1 %v2525_v11  ;;  %v2531_v11 = vld [vmem:[%s4692_s7 + $0x110] sm:$0xff] }
 0x234   : > { %3079 = vmatpush3.msra.mxu0 %v1831_v26  ;;  %3117 = vmatprep.subr.mxu1 %v4759_v51  ;;  %v2549_v26 = vld [vmem:[%s4692_s7 + $0x1a0] sm:$0xff] }
 0x235   : > { %3080 = vmatprep.subr.mxu0 %v4759_v51  ;;  %3118 = vmatpush3.msra.mxu1 %v2524_v13  ;;  %v2530_v13 = vld [vmem:[%s4692_s7 + $0x108] sm:$0xff] }
 0x236   : > { %3081 = vmatpush3.msra.mxu0 %v1830_v12  ;;  %3119 = vmatprep.subr.mxu1 %v4759_v51  ;;  %v2548_v12 = vld [vmem:[%s4692_s7 + $0x198] sm:$0xff] }
 0x237   : > { %3082 = vmatprep.subr.mxu0 %v4759_v51  ;;  %3120 = vmatpush3.msra.mxu1 %v2523_v44  ;;  %v2529_v44 = vld [vmem:[%s4692_s7 + $0x100] sm:$0xff] }
 0x238   : > { %3083 = vmatpush3.msra.mxu0 %v1829_v10  ;;  %3121 = vmatprep.subr.mxu1 %v4759_v51  ;;  %v2547_v10 = vld [vmem:[%s4692_s7 + $0x190] sm:$0xff] }
 0x239   : > { %3084 = vmatprep.subr.mxu0 %v4759_v51  ;;  %3122 = vmatpush3.msra.mxu1 %v2522_v3 }
 0x23a   : > { %3085 = vmatpush3.msra.mxu0 %v1828_v27  ;;  %3123 = vmatprep.subr.mxu1 %v4759_v51  ;;  %v2546_v27 = vld [vmem:[%s4692_s7 + $0x188] sm:$0xff] }
 0x23b   : > { %3086 = vmatprep.subr.mxu0 %v4759_v51  ;;  %3124 = vmatpush3.msra.mxu1 %v2521_v29 }
 0x23c   : > { %3087 = vmatpush3.msra.mxu0 %v1827_v28  ;;  %3125 = vmatprep.subr.mxu1 %v4759_v51  ;;  %v2545_v28 = vld [vmem:[%s4692_s7 + $0x180] sm:$0xff] }
 0x23d   : > { %3088 = vmatprep.subr.mxu0 %v4759_v51  ;;  %3106 = vmatprep.mubr.msk.f32.mxu0 %vm3333_vm1, %v4759_v51 }
 0x23e   : > { %3089 = vmatpush3.msra.mxu0 %v1826_v30  ;;  %3126 = vmatpush3.msra.mxu1 %v2520_v33  ;;  %v2179_v30 = vld [vmem:[%s4694_s9 + $0x18] sm:$0xff]  ;;  %v2176_v33 = vld [vmem:[%s4694_s9] sm:$0xff] }
 0x23f   : > { %3090 = vmatprep.subr.mxu0 %v4759_v51  ;;  %3127 = vmatprep.subr.mxu1 %v4759_v51 }
 0x240   : > { %3091 = vmatpush3.msra.mxu0 %v1825_v31  ;;  %3128 = vmatpush3.msra.mxu1 %v2519_v35  ;;  %v2178_v31 = vld [vmem:[%s4694_s9 + $0x10] sm:$0xff] }
 0x241   : > { %3092 = vmatprep.subr.mxu0 %v4759_v51  ;;  %3129 = vmatprep.subr.mxu1 %v4759_v51 }
 0x242   : > { %3093 = vmatpush3.msra.mxu0 %v1824_v32  ;;  %3130 = vmatpush3.msra.mxu1 %v2518_v37  ;;  %v2177_v32 = vld [vmem:[%s4694_s9 + $0x8] sm:$0xff] }
 0x243   : > { %3094 = vmatprep.subr.mxu0 %v4759_v51  ;;  %3131 = vmatprep.subr.mxu1 %v4759_v51 }
 0x244   : > { %3095 = vmatpush3.msra.mxu0 %v1823_v34  ;;  %3132 = vmatpush3.msra.mxu1 %v2517_v39 }
 0x245   : > { %3096 = vmatprep.subr.mxu0 %v4759_v51  ;;  %3133 = vmatprep.subr.mxu1 %v4759_v51 }
 0x246   : > { %3097 = vmatpush3.msra.mxu0 %v1822_v36  ;;  %3134 = vmatpush3.msra.mxu1 %v2516_v41 }
 0x247   : > { %3098 = vmatprep.subr.mxu0 %v4759_v51  ;;  %3135 = vmatprep.subr.mxu1 %v4759_v51 }
 0x248   : > { %3099 = vmatpush3.msra.mxu0 %v1821_v38  ;;  %3136 = vmatpush3.msra.mxu1 %v2515_v43  ;;  %v1817_v38 = vld [vmem:[%s4693_s8] sm:$0x1] }
 0x249   : > { %3100 = vmatprep.subr.mxu0 %v4759_v51  ;;  %3137 = vmatprep.subr.mxu1 %v4759_v51 }
 0x24a   : > { %3101 = vmatpush3.msra.mxu0 %v1820_v40  ;;  %3138 = vmatpush3.msra.mxu1 %v2514_v46 }
 0x24b   : > { %3102 = vmatprep.subr.mxu0 %v4759_v51  ;;  %3139 = vmatprep.subr.mxu1 %v4759_v51 }
 0x24c   : > { %3103 = vmatpush3.msra.mxu0 %v1819_v42  ;;  %3140 = vmatpush3.msra.mxu1 %v2513_v47 }
 0x24d   : > { %3104 = vmatprep.subr.mxu0 %v4759_v51  ;;  %3179 = vmatprep.subr.mxu1 %v4759_v51 }
 0x24e   : > { %3105 = vmatpush3.msra.mxu0 %v1818_v45 }
 0x24f   : > { %3144 = vmatprep.subr.mxu0 %v4759_v51 }
 0x2ec   : > { %v2846_v48 = vpop.f32.mrf.mxu1 }
 0x2ee   : > { %v2847_v50 = vpop.f32.mrf.mxu1 }
 0x2ef   : > { %v2811_v49 = vpop.f32.mrf.mxu0  ;;  %v2848_v53 = vadd.f32 %v2847_v50, %v2846_v48 }
 0x2f1   : > { %v2812_v52 = vpop.f32.mrf.mxu0 }
 0x2f2   : > { %v2813_v54 = vadd.f32 %v2812_v52, %v2811_v49 }
 0x2f4   : > { %v1803_v56 = vadd.f32 %v2848_v53, %v2813_v54 }
 0x2f6   : > { %v1813_v57 = vadd.f32 %v2512_v55, %v1803_v56 }
 0x2f8   : > { %vm1814_vm8 = vcmp.ge.f32.partialorder %v1813_v57, 0.0  ;;  %v1815_v58 = vmul.f32 0.2, %v1813_v57 }
 0x2fa   : > { %v4493_v60 = vsel %vm1814_vm8, %v1813_v57, %v1815_v58 }
 0x2fb   : > { %3107 = vmatmul.mubr.f32.vlgmr.msra.gmra.mxu0 %v4493_v60  ;;  %v1923_v61 = vrot.slane %v4493_v60, 1  ;;  %v2013_v3 = vrot.slane %v4493_v60, 2  ;;  %v2103_v29 = vrot.slane %v4493_v60, 3 }
 0x2fc   : > { %3145 = vmatpush3.msra.mxu0 %v2544_v59  ;;  %3176 = vmatprep.mubr.msk.f32.mxu0 %vm3333_vm1, %v4759_v51 }
 0x2fd   : > { %3146 = vmatprep.subr.mxu0 %v4759_v51  ;;  %3142 = vmatmul.mubr.f32.vlgmr.msra.gmra.mxu1 %v1923_v61 }
 0x2fe   : > { %3147 = vmatpush3.msra.mxu0 %v2543_v62  ;;  %3180 = vmatpush3.msra.mxu1 %v2560_v63 }
 0x2ff   : > { %3148 = vmatprep.subr.mxu0 %v4759_v51  ;;  %3181 = vmatprep.subr.mxu1 %v4759_v51 }
 0x300   : > { %3149 = vmatpush3.msra.mxu0 %v2542_v0  ;;  %3182 = vmatpush3.msra.mxu1 %v2559_v1 }
 0x301   : > { %3150 = vmatprep.subr.mxu0 %v4759_v51  ;;  %3183 = vmatprep.subr.mxu1 %v4759_v51 }
 0x302   : > { %3151 = vmatpush3.msra.mxu0 %v2541_v2  ;;  %3184 = vmatpush3.msra.mxu1 %v2558_v4 }
 0x303   : > { %3152 = vmatprep.subr.mxu0 %v4759_v51  ;;  %3185 = vmatprep.subr.mxu1 %v4759_v51 }
 0x304   : > { %3153 = vmatpush3.msra.mxu0 %v2540_v5  ;;  %3186 = vmatpush3.msra.mxu1 %v2557_v6 }
 0x305   : > { %3154 = vmatprep.subr.mxu0 %v4759_v51  ;;  %3187 = vmatprep.subr.mxu1 %v4759_v51 }
 0x306   : > { %3155 = vmatpush3.msra.mxu0 %v2539_v7  ;;  %3188 = vmatpush3.msra.mxu1 %v2556_v8 }
 0x307   : > { %3156 = vmatprep.subr.mxu0 %v4759_v51  ;;  %3189 = vmatprep.subr.mxu1 %v4759_v51 }
 0x308   : > { %3157 = vmatpush3.msra.mxu0 %v2538_v9  ;;  %3190 = vmatpush3.msra.mxu1 %v2555_v22 }
 0x309   : > { %3158 = vmatprep.subr.mxu0 %v4759_v51  ;;  %3191 = vmatprep.subr.mxu1 %v4759_v51 }
 0x30a   : > { %3159 = vmatpush3.msra.mxu0 %v2537_v20  ;;  %3192 = vmatpush3.msra.mxu1 %v2554_v23 }
 0x30b   : > { %3160 = vmatprep.subr.mxu0 %v4759_v51  ;;  %3193 = vmatprep.subr.mxu1 %v4759_v51 }
 0x30c   : > { %3161 = vmatpush3.msra.mxu0 %v2536_v21  ;;  %3194 = vmatpush3.msra.mxu1 %v2553_v24 }
 0x30d   : > { %3162 = vmatprep.subr.mxu0 %v4759_v51  ;;  %3195 = vmatprep.subr.mxu1 %v4759_v51 }
 0x30e   : > { %3163 = vmatpush3.msra.mxu0 %v2535_v17  ;;  %3196 = vmatpush3.msra.mxu1 %v2552_v18 }
 0x30f   : > { %3164 = vmatprep.subr.mxu0 %v4759_v51  ;;  %3197 = vmatprep.subr.mxu1 %v4759_v51 }
 0x310   : > { %3165 = vmatpush3.msra.mxu0 %v2534_v16  ;;  %3198 = vmatpush3.msra.mxu1 %v2551_v19 }
 0x311   : > { %3166 = vmatprep.subr.mxu0 %v4759_v51  ;;  %3199 = vmatprep.subr.mxu1 %v4759_v51 }
 0x312   : > { %3167 = vmatpush3.msra.mxu0 %v2533_v25  ;;  %3200 = vmatpush3.msra.mxu1 %v2550_v14 }
 0x313   : > { %3168 = vmatprep.subr.mxu0 %v4759_v51  ;;  %3201 = vmatprep.subr.mxu1 %v4759_v51 }
 0x314   : > { %3169 = vmatpush3.msra.mxu0 %v2532_v15  ;;  %3202 = vmatpush3.msra.mxu1 %v2549_v26 }
 0x315   : > { %3170 = vmatprep.subr.mxu0 %v4759_v51  ;;  %3203 = vmatprep.subr.mxu1 %v4759_v51 }
 0x316   : > { %3171 = vmatpush3.msra.mxu0 %v2531_v11  ;;  %3204 = vmatpush3.msra.mxu1 %v2548_v12 }
 0x317   : > { %3172 = vmatprep.subr.mxu0 %v4759_v51  ;;  %3205 = vmatprep.subr.mxu1 %v4759_v51 }
 0x318   : > { %3173 = vmatpush3.msra.mxu0 %v2530_v13  ;;  %3206 = vmatpush3.msra.mxu1 %v2547_v10 }
 0x319   : > { %3174 = vmatprep.subr.mxu0 %v4759_v51  ;;  %3207 = vmatprep.subr.mxu1 %v4759_v51 }
 0x31a   : > { %3175 = vmatpush3.msra.mxu0 %v2529_v44  ;;  %3208 = vmatpush3.msra.mxu1 %v2546_v27 }
 0x31b   : > { %3177 = vmatmul.mubr.f32.vlgmr.msra.gmra.mxu0 %v2013_v3  ;;  %3209 = vmatprep.subr.mxu1 %v4759_v51 }
 0x31c   : > { %3210 = vmatpush3.msra.mxu1 %v2545_v28  ;;  %3211 = vmatprep.mubr.msk.f32.mxu1 %vm3333_vm1, %v4759_v51 }
 0x31d   : > { %3212 = vmatmul.mubr.f32.vlgmr.msra.gmra.mxu1 %v2103_v29  ;;  %3214 = vmatprep.subr.mxu0 %v4759_v51 }
 0x31e   : > { %3222 = vmatprep.mubr.msk.f32.mxu0 %vm3333_vm1, %v4759_v51  ;;  %3215 = vmatpush3.msra.mxu0 %v2179_v30 }
 0x31f   : > { %3216 = vmatprep.subr.mxu0 %v4759_v51 }
 0x320   : > { %3217 = vmatpush3.msra.mxu0 %v2178_v31 }
 0x321   : > { %3218 = vmatprep.subr.mxu0 %v4759_v51 }
 0x322   : > { %3219 = vmatpush3.msra.mxu0 %v2177_v32 }
 0x323   : > { %3220 = vmatprep.subr.mxu0 %v4759_v51 }
 0x324   : > { %3221 = vmatpush3.msra.mxu0 %v2176_v33 }
 0x3bb   : > { %v1900_v34 = vpop.f32.mrf.mxu0 }
 0x3bc   : > { %v1904_v39 = vadd.f32 %v1900_v34, %v1817_v38 }
 0x3bd   : > { %v3108_v35 = vpop.f32.mrf.mxu0  ;;  %v1991_v36 = vpop.f32.mrf.mxu1 }
 0x3be   : > { %v1995_v40 = vadd.f32 %v1991_v36, %v1904_v39 }
 0x3bf   : > { %v3143_v37 = vpop.f32.mrf.mxu1 }
 0x3db   : > { %v2081_v41 = vpop.f32.mrf.mxu0 }
 0x3dc   : > { %v2085_v42 = vadd.f32 %v2081_v41, %v1995_v40 }
 0x3dd   : > { %v3178_v51 = vpop.f32.mrf.mxu0  ;;  %v2171_v43 = vpop.f32.mrf.mxu1 }
 0x3de   : > { %v2175_v45 = vadd.f32 %v2171_v43, %v2085_v42 }
 0x3df   : > { %v3213_v46 = vpop.f32.mrf.mxu1 }
 0x3e0   : > { %3223 = vmatmul.mubr.msk.f32.vlgmr.msra.gmra.mxu0 %vm2181_vm9, %v2175_v45  ;;  %2262 = vst.msk [vmem:[%s408_s20] sm:$0x1] %vm2261_vm10, %v2175_v45 }
 0x3e1   : > { %3283 = shalt.err (!%p3280_p3)
}
 0x3e2   : > { %s3284_s10 = scalar_lea.hbm %s2279_s16, 16  ;;  %s3288_s27 = scalar_lea.hbm %s4696_s11, 32 }
 0x3e3   : > { %p3285_p4 = scmp.ne.s32.totalorder %s2279_s16, %s3284_s10  ;;  %p3289_p9 = scmp.lt.s32.totalorder %s2279_s16, %s4696_s11 }
 0x3e4   : > { %p3290_p10 = scmp.lt.s32.totalorder %s3288_s27, %s3284_s10 }
 0x3e5   : > { %p3286_p7 = pnand %p3285_p4, %p3441_p5 }
 0x3e6   : > { %p3291_p11 = por %p3290_p10, %p3289_p9 }
 0x3e7   : > { %p3287_p8 = pneg %p3286_p7 }
 0x3e9   : > { %p3292_p12 = pnand %p3291_p11, %p3287_p8 }
 0x3eb   : > { %3295 = shalt.err (!%p3292_p12)
}
 0x3ec   : > { %3225 = dma.vmem_to_hbm [thread:$0]  (%p3441_p5), %s2282_s29, 16, %s2279_s16, %s2266_s17   ;;  %v2180_v47 = vld [vmem:[#allocation4] sm:$0x1]  ;;  %vm2263_vm11 = vcmask 0  }
 0x3ed   : > { %s421_s0 = scalar_lea.vmem %s4697_s12, %s3509_s22 }
 0x4a0   : > { %v2251_v48 = vpop.f32.mrf.mxu0 }
 0x4a1   : > { %v2252_v49 = vadd.f32 %v2251_v48, %v2180_v47 }
 0x4a2   : > { %v3224_v50 = vpop.f32.mrf.mxu0 }
 0x4a3   : > { %v2562_v52 = vmul.f32 -1.442695, %v2252_v49 }
 0x4a5   : > { %3266 = vpow2.f32 %v2562_v52 }
 0x4b2   : > { %v3267_v53 = vpop.eup %3266 }
 0x4b3   : > { %v2258_v54 = vadd.f32 1.0, %v3267_v53 }
 0x4b5   : > { %3268 = vrcp.f32 %v2258_v54 }
 0x4c2   : > { %v3269_v55 = vpop.eup %3268 }
 0x4c3   : > { %2264 = vst.msk [vmem:[%s421_s0] sm:$0x1] %vm2263_vm11, %v3269_v55 }
 0x4c4 PF: > { %p3231_p5 = scmp.ge.s32.totalorder %s3330_s26, 2  ;;  %s2296_s14 = sand.u32 1, %s3318_s23  }
 0x4c5   : > { %s2297_s29 = scalar_lea.sflag [#allocation6], %s2296_s14 }
 0x4c6   : > { %p3228_p13 = pnand %p3231_p5, %p3445_p6 }
 0x4c8   : > { %p3229_p0 = pneg %p3228_p13 }
 0x4ca   : > { %3313 = dma.done.wait (%p3229_p0), %s2297_s29, 16  }
 0x4cb   : > { %3315 = vsyncadd (%p3229_p0), %s2297_s29, 4294967280  ;;  %p25_p1 = scmp.ge.s32.totalorder %s3428_s28, 4   ;;  %s4760_s23 = smov %s3322_s24 }
 0x4cc   : > { %s4761_s24 = smov %s3326_s25  ;;  %s4762_s25 = smov %s3439_s13 }
 0x4cd   : > { %s4763_s26 = smov %s3428_s28  ;;  %27 = sbr.rel (!%p25_p1) target bundleno = 7 (0x7), region = 121 }
 0x4d2   :  { %2307 = vsyncpa [#allocation6], 1 }
 0x4d3   :  { %2309 = vsyncpa [#allocation6 + $0x1], 1 }

</bundles_post_ra>
